<compile_context>
chip_gen: v7x
topology: tpu7x:2x2x1
jax: 0.10.0
libtpu: 0.0.40
codegen_flags: <defaults>
</compile_context>

<pallas_src>
from functools import lru_cache, partial

import numpy as np
import jax
import jax.numpy as jnp
from jax import lax
from jax.experimental import pallas as pl
from jax.experimental.pallas import tpu as pltpu

_KSIZE = 11
_SIGMA = 1.5
_C1 = (0.01 * 255.0) ** 2
_C2 = (0.03 * 255.0) ** 2
_NMAPS = 5  # a1, a2, a1*a1, a2*a2, a1*a2


def _round_up(x, m):
    return (x + m - 1) // m * m


def _gaussian_kernel_1d():
    # Same as cv2.getGaussianKernel(11, 1.5): normalized sampled Gaussian.
    x = np.arange(_KSIZE, dtype=np.float64) - (_KSIZE - 1) / 2.0
    g = np.exp(-(x ** 2) / (2.0 * _SIGMA ** 2))
    g /= g.sum()
    return g.astype(np.float32)


@lru_cache(maxsize=None)
def _filters_device(H, W):
    """Cached, tile-padded filter matrices (built once per (H, W)).

    SH (Hv_pad, H)     : left-multiply  -> valid Gaussian conv over rows.
    SW (W_pad, Wv_pad) : right-multiply -> valid Gaussian conv over cols,
                         SHARED by all maps / channels (no block diagonal).
    Padded rows/cols are zero, so padded outputs carry no image contribution.
    """
    g = _gaussian_kernel_1d()
    Hv, Wv = H - _KSIZE + 1, W - _KSIZE + 1
    Hv_pad = _round_up(Hv, 8)
    W_pad = _round_up(W, 128)
    Wv_pad = _round_up(Wv, 128)
    sh = np.zeros((Hv_pad, H), dtype=np.float32)
    for p in range(Hv):
        sh[p, p:p + _KSIZE] = g
    sw = np.zeros((W_pad, Wv_pad), dtype=np.float32)
    for q in range(Wv):
        sw[q:q + _KSIZE, q] = g
    return jnp.asarray(sh), jnp.asarray(sw)


def _vmem_capacity_bytes():
    try:
        return int(pltpu.get_tpu_info().vmem_capacity_bytes)
    except Exception:
        return 64 * 1024 * 1024  # conservative (v7x per-TC)


def _vmem_bytes(cb, H, W_pad, Hv_pad, Wv_pad):
    """Rough per-grid-step VMEM footprint (double-buffered inputs included)."""
    f = 4
    imgs = 2 * 2 * cb * H * W_pad * f                # img1/img2 blocks, 2 buffers
    xbuf = H * _NMAPS * cb * W_pad * f               # persistent map scratch
    t = Hv_pad * _NMAPS * cb * W_pad * f             # stage-1 intermediate
    filt = 2 * (Hv_pad * H + W_pad * Wv_pad) * f     # SH + SW (worst case 2x)
    temps = 12 * Hv_pad * Wv_pad * f                 # per-channel map temps
    outb = 2 * 8 * 128 * f
    return imgs + xbuf + t + filt + temps + outb


def _choose_cb(C, H, W_pad, Hv_pad, Wv_pad, budget):
    """Largest divisor of C whose per-step footprint fits the VMEM budget."""
    for cb in range(C, 0, -1):
        if C % cb == 0 and _vmem_bytes(cb, H, W_pad, Hv_pad, Wv_pad) <= budget:
            return cb
    return 1


def _ssim_kernel(img1_ref, img2_ref, sh_ref, sw_ref, out_ref, xbuf_ref, *, hv, wv):
    """One grid step = one block of `cb` channels.

    img1_ref / img2_ref : (cb, H, W_pad) f32 in [0, 1]  (VMEM block)
    sh_ref              : (Hv_pad, H)     f32 row filter (resident)
    sw_ref              : (W_pad, Wv_pad) f32 col filter (resident, shared)
    out_ref             : (8, 128)        f32 lane-dense partial-sum tile
    xbuf_ref            : (H, 5*cb*W_pad) f32 persistent map scratch (VMEM)
    """
    cb, H, W_pad = img1_ref.shape
    Hv_pad = sh_ref.shape[0]
    Wv_pad = sw_ref.shape[1]

    # ---- Build the five maps per channel directly into the padded scratch ----
    # (static lane-aligned slice stores; replicates (x*255).astype(uint8) via
    #  floor since inputs are in [0, 1)).
    for c in range(cb):
        a1 = jnp.floor(img1_ref[c] * 255.0)
        a2 = jnp.floor(img2_ref[c] * 255.0)
        maps = (a1, a2, a1 * a1, a2 * a2, a1 * a2)
        for m, v in enumerate(maps):
            off = (c * _NMAPS + m) * W_pad
            xbuf_ref[:, off:off + W_pad] = v

    # ---- Stage 1: valid row filter, ONE MXU matmul for all maps & channels ----
    t = jnp.dot(sh_ref[...], xbuf_ref[...],
                preferred_element_type=jnp.float32)          # (Hv_pad, 5*cb*W_pad)

    # valid-region mask (padded rows/cols excluded from the sum)
    row = lax.broadcasted_iota(jnp.int32, (Hv_pad, Wv_pad), 0)
    col = lax.broadcasted_iota(jnp.int32, (Hv_pad, Wv_pad), 1)
    valid = jnp.logical_and(row < hv, col < wv)

    sw = sw_ref[...]
    acc = jnp.zeros((8, 128), jnp.float32)

    for c in range(cb):
        base = c * _NMAPS

        # ---- Stage 2: shared column filter, lane-aligned slices, no waste ----
        def colf(m):
            off = (base + m) * W_pad
            return jnp.dot(t[:, off:off + W_pad], sw,
                           preferred_element_type=jnp.float32)   # (Hv_pad, Wv_pad)

        mu1, mu2, e11, e22, e12 = colf(0), colf(1), colf(2), colf(3), colf(4)

        mu1_sq = mu1 * mu1
        mu2_sq = mu2 * mu2
        mu1_mu2 = mu1 * mu2
        sigma1_sq = e11 - mu1_sq
        sigma2_sq = e22 - mu2_sq
        sigma12 = e12 - mu1_mu2

        ssim_map = ((2.0 * mu1_mu2 + _C1) * (2.0 * sigma12 + _C2)) / (
            (mu1_sq + mu2_sq + _C1) * (sigma1_sq + sigma2_sq + _C2))
        ssim_map = jnp.where(valid, ssim_map, 0.0)

        # Fold into a vreg-shaped accumulator: pure VPU adds, no XLU reduce.
        for r0 in range(0, Hv_pad, 8):
            for c0 in range(0, Wv_pad, 128):
                acc = acc + ssim_map[r0:r0 + 8, c0:c0 + 128]

    out_ref[...] = acc


@partial(jax.jit, static_argnames=("cb",))
def _ssim_call(img1, img2, sh, sw, *, cb):
    C, H, W = img1.shape
    Hv_pad = sh.shape[0]
    W_pad, Wv_pad = sw.shape
    hv, wv = H - _KSIZE + 1, W - _KSIZE + 1
    nblk = C // cb

    img1 = img1.astype(jnp.float32)
    img2 = img2.astype(jnp.float32)
    if W_pad != W:
        pad = ((0, 0), (0, 0), (0, W_pad - W))
        img1 = jnp.pad(img1, pad)
        img2 = jnp.pad(img2, pad)

    budget = int(_vmem_capacity_bytes() * 0.7)
    need = _vmem_bytes(cb, H, W_pad, Hv_pad, Wv_pad)
    vmem_limit = int(min(budget, max(32 * 1024 * 1024, 2 * need)))

    kernel = partial(_ssim_kernel, hv=hv, wv=wv)
    partials = pl.pallas_call(
        kernel,
        out_shape=jax.ShapeDtypeStruct((nblk, 8, 128), jnp.float32),
        grid_spec=pltpu.PrefetchScalarGridSpec(
            num_scalar_prefetch=0,
            grid=(nblk,),  # channel blocks: independent -> "parallel"
            in_specs=[
                pl.BlockSpec((cb, H, W_pad), lambda b: (b, 0, 0)),   # img1 block
                pl.BlockSpec((cb, H, W_pad), lambda b: (b, 0, 0)),   # img2 block
                pl.BlockSpec((Hv_pad, H), lambda b: (0, 0)),         # SH (resident)
                pl.BlockSpec((W_pad, Wv_pad), lambda b: (0, 0)),     # SW (resident)
            ],
            out_specs=pl.BlockSpec((None, 8, 128), lambda b: (b, 0, 0)),
            scratch_shapes=[pltpu.VMEM((H, _NMAPS * cb * W_pad), jnp.float32)],
        ),
        compiler_params=pltpu.CompilerParams(
            dimension_semantics=("parallel",),
            vmem_limit_bytes=vmem_limit,
        ),
    )(img1, img2, sh, sw)

    inv_n = 1.0 / float(C * hv * wv)
    return jnp.sum(partials) * inv_n


def ssim_pallas(img1, img2):
    """img1, img2: (C, H, W) float32 in [0, 1]. Returns scalar f32 SSIM."""
    assert img1.shape == img2.shape, f"Image shapes differ: {img1.shape}, {img2.shape}"
    C, H, W = img1.shape
    assert H >= _KSIZE and W >= _KSIZE, "spatial dims must be >= 11"
    sh, sw = _filters_device(H, W)
    Hv_pad = sh.shape[0]
    W_pad, Wv_pad = sw.shape
    budget = int(_vmem_capacity_bytes() * 0.7)
    cb = _choose_cb(C, H, W_pad, Hv_pad, Wv_pad, budget)
    return _ssim_call(img1, img2, sh, sw, cb=cb)


if __name__ == "__main__":
    key = jax.random.PRNGKey(0)
    k1, k2 = jax.random.split(key)
    C, H, W = 4, 16, 16
    img1 = jax.random.uniform(k1, (C, H, W), dtype=jnp.float32)
    img2 = jnp.clip(
        img1 + 0.05 * jax.random.normal(k2, (C, H, W), dtype=jnp.float32),
        0.0, 0.999,
    )

    result = ssim_pallas(img1, img2)
    jax.block_until_ready(result)
    print("KERNEL_OK")
</pallas_src>

<mosaic_0001>
module attributes {stable_mosaic.version = 11 : i64} {
  func.func @_ssim_kernel(%arg0: i32, %arg1: memref<4x16x128xf32, #tpu.memory_space<vmem>>, %arg2: memref<4x16x128xf32, #tpu.memory_space<vmem>>, %arg3: memref<8x16xf32, #tpu.memory_space<vmem>>, %arg4: memref<128x128xf32, #tpu.memory_space<vmem>>, %arg5: memref<1x8x128xf32, #tpu.memory_space<vmem>>, %arg6: memref<16x2560xf32, #tpu.memory_space<vmem>>) attributes {dimension_semantics = [#tpu.dimension_semantics<parallel>], iteration_bounds = array<i64: 1>, scalar_prefetch = 0 : i64, scratch_operands = 1 : i64, tpu.core_type = #tpu.core_type<tc>, window_params = [{transform_indices = @transform_0, window_bounds = array<i64: 4, 16, 128>}, {transform_indices = @transform_1, window_bounds = array<i64: 4, 16, 128>}, {pipeline_mode = #tpu.pipeline_mode<synchronous>, transform_indices = @transform_2, window_bounds = array<i64: 8, 16>}, {pipeline_mode = #tpu.pipeline_mode<synchronous>, transform_indices = @transform_3, window_bounds = array<i64: 128, 128>}, {transform_indices = @transform_4, window_bounds = array<i64: 1, 8, 128>}]} {
    %c0 = arith.constant 0 : index
    %c0_0 = arith.constant 0 : index
    %c0_1 = arith.constant 0 : index
    %0 = vector.load %arg1[%c0, %c0_0, %c0_1] : memref<4x16x128xf32, #tpu.memory_space<vmem>>, vector<1x16x128xf32>
    %1 = vector.shape_cast %0 : vector<1x16x128xf32> to vector<16x128xf32>
    %cst = arith.constant 2.550000e+02 : f32
    %2 = vector.broadcast %cst : f32 to vector<16x128xf32>
    %3 = arith.mulf %1, %2 : vector<16x128xf32>
    %4 = math.floor %3 : vector<16x128xf32>
    %c0_2 = arith.constant 0 : index
    %c0_3 = arith.constant 0 : index
    %c0_4 = arith.constant 0 : index
    %5 = vector.load %arg2[%c0_2, %c0_3, %c0_4] : memref<4x16x128xf32, #tpu.memory_space<vmem>>, vector<1x16x128xf32>
    %6 = vector.shape_cast %5 : vector<1x16x128xf32> to vector<16x128xf32>
    %cst_5 = arith.constant 2.550000e+02 : f32
    %7 = vector.broadcast %cst_5 : f32 to vector<16x128xf32>
    %8 = arith.mulf %6, %7 : vector<16x128xf32>
    %9 = math.floor %8 : vector<16x128xf32>
    %10 = arith.mulf %4, %4 : vector<16x128xf32>
    %11 = arith.mulf %9, %9 : vector<16x128xf32>
    %12 = arith.mulf %4, %9 : vector<16x128xf32>
    %c0_6 = arith.constant 0 : index
    %c0_7 = arith.constant 0 : index
    %13 = vector.load %arg6[%c0_6, %c0_7] : memref<16x2560xf32, #tpu.memory_space<vmem>>, vector<16x128xf32>
    tpu.vector_store %arg6[%c0_6, %c0_7], %4 {strides = array<i32>} : memref<16x2560xf32, #tpu.memory_space<vmem>>, vector<16x128xf32>,
    %c0_8 = arith.constant 0 : index
    %c128 = arith.constant 128 : index
    %14 = vector.load %arg6[%c0_8, %c128] : memref<16x2560xf32, #tpu.memory_space<vmem>>, vector<16x128xf32>
    tpu.vector_store %arg6[%c0_8, %c128], %9 {strides = array<i32>} : memref<16x2560xf32, #tpu.memory_space<vmem>>, vector<16x128xf32>,
    %c0_9 = arith.constant 0 : index
    %c256 = arith.constant 256 : index
    %15 = vector.load %arg6[%c0_9, %c256] : memref<16x2560xf32, #tpu.memory_space<vmem>>, vector<16x128xf32>
    tpu.vector_store %arg6[%c0_9, %c256], %10 {strides = array<i32>} : memref<16x2560xf32, #tpu.memory_space<vmem>>, vector<16x128xf32>,
    %c0_10 = arith.constant 0 : index
    %c384 = arith.constant 384 : index
    %16 = vector.load %arg6[%c0_10, %c384] : memref<16x2560xf32, #tpu.memory_space<vmem>>, vector<16x128xf32>
    tpu.vector_store %arg6[%c0_10, %c384], %11 {strides = array<i32>} : memref<16x2560xf32, #tpu.memory_space<vmem>>, vector<16x128xf32>,
    %c0_11 = arith.constant 0 : index
    %c512 = arith.constant 512 : index
    %17 = vector.load %arg6[%c0_11, %c512] : memref<16x2560xf32, #tpu.memory_space<vmem>>, vector<16x128xf32>
    tpu.vector_store %arg6[%c0_11, %c512], %12 {strides = array<i32>} : memref<16x2560xf32, #tpu.memory_space<vmem>>, vector<16x128xf32>,
    %c1 = arith.constant 1 : index
    %c0_12 = arith.constant 0 : index
    %c0_13 = arith.constant 0 : index
    %18 = vector.load %arg1[%c1, %c0_12, %c0_13] : memref<4x16x128xf32, #tpu.memory_space<vmem>>, vector<1x16x128xf32>
    %19 = vector.shape_cast %18 : vector<1x16x128xf32> to vector<16x128xf32>
    %cst_14 = arith.constant 2.550000e+02 : f32
    %20 = vector.broadcast %cst_14 : f32 to vector<16x128xf32>
    %21 = arith.mulf %19, %20 : vector<16x128xf32>
    %22 = math.floor %21 : vector<16x128xf32>
    %c1_15 = arith.constant 1 : index
    %c0_16 = arith.constant 0 : index
    %c0_17 = arith.constant 0 : index
    %23 = vector.load %arg2[%c1_15, %c0_16, %c0_17] : memref<4x16x128xf32, #tpu.memory_space<vmem>>, vector<1x16x128xf32>
    %24 = vector.shape_cast %23 : vector<1x16x128xf32> to vector<16x128xf32>
    %cst_18 = arith.constant 2.550000e+02 : f32
    %25 = vector.broadcast %cst_18 : f32 to vector<16x128xf32>
    %26 = arith.mulf %24, %25 : vector<16x128xf32>
    %27 = math.floor %26 : vector<16x128xf32>
    %28 = arith.mulf %22, %22 : vector<16x128xf32>
    %29 = arith.mulf %27, %27 : vector<16x128xf32>
    %30 = arith.mulf %22, %27 : vector<16x128xf32>
    %c0_19 = arith.constant 0 : index
    %c640 = arith.constant 640 : index
    %31 = vector.load %arg6[%c0_19, %c640] : memref<16x2560xf32, #tpu.memory_space<vmem>>, vector<16x128xf32>
    tpu.vector_store %arg6[%c0_19, %c640], %22 {strides = array<i32>} : memref<16x2560xf32, #tpu.memory_space<vmem>>, vector<16x128xf32>,
    %c0_20 = arith.constant 0 : index
    %c768 = arith.constant 768 : index
    %32 = vector.load %arg6[%c0_20, %c768] : memref<16x2560xf32, #tpu.memory_space<vmem>>, vector<16x128xf32>
    tpu.vector_store %arg6[%c0_20, %c768], %27 {strides = array<i32>} : memref<16x2560xf32, #tpu.memory_space<vmem>>, vector<16x128xf32>,
    %c0_21 = arith.constant 0 : index
    %c896 = arith.constant 896 : index
    %33 = vector.load %arg6[%c0_21, %c896] : memref<16x2560xf32, #tpu.memory_space<vmem>>, vector<16x128xf32>
    tpu.vector_store %arg6[%c0_21, %c896], %28 {strides = array<i32>} : memref<16x2560xf32, #tpu.memory_space<vmem>>, vector<16x128xf32>,
    %c0_22 = arith.constant 0 : index
    %c1024 = arith.constant 1024 : index
    %34 = vector.load %arg6[%c0_22, %c1024] : memref<16x2560xf32, #tpu.memory_space<vmem>>, vector<16x128xf32>
    tpu.vector_store %arg6[%c0_22, %c1024], %29 {strides = array<i32>} : memref<16x2560xf32, #tpu.memory_space<vmem>>, vector<16x128xf32>,
    %c0_23 = arith.constant 0 : index
    %c1152 = arith.constant 1152 : index
    %35 = vector.load %arg6[%c0_23, %c1152] : memref<16x2560xf32, #tpu.memory_space<vmem>>, vector<16x128xf32>
    tpu.vector_store %arg6[%c0_23, %c1152], %30 {strides = array<i32>} : memref<16x2560xf32, #tpu.memory_space<vmem>>, vector<16x128xf32>,
    %c2 = arith.constant 2 : index
    %c0_24 = arith.constant 0 : index
    %c0_25 = arith.constant 0 : index
    %36 = vector.load %arg1[%c2, %c0_24, %c0_25] : memref<4x16x128xf32, #tpu.memory_space<vmem>>, vector<1x16x128xf32>
    %37 = vector.shape_cast %36 : vector<1x16x128xf32> to vector<16x128xf32>
    %cst_26 = arith.constant 2.550000e+02 : f32
    %38 = vector.broadcast %cst_26 : f32 to vector<16x128xf32>
    %39 = arith.mulf %37, %38 : vector<16x128xf32>
    %40 = math.floor %39 : vector<16x128xf32>
    %c2_27 = arith.constant 2 : index
    %c0_28 = arith.constant 0 : index
    %c0_29 = arith.constant 0 : index
    %41 = vector.load %arg2[%c2_27, %c0_28, %c0_29] : memref<4x16x128xf32, #tpu.memory_space<vmem>>, vector<1x16x128xf32>
    %42 = vector.shape_cast %41 : vector<1x16x128xf32> to vector<16x128xf32>
    %cst_30 = arith.constant 2.550000e+02 : f32
    %43 = vector.broadcast %cst_30 : f32 to vector<16x128xf32>
    %44 = arith.mulf %42, %43 : vector<16x128xf32>
    %45 = math.floor %44 : vector<16x128xf32>
    %46 = arith.mulf %40, %40 : vector<16x128xf32>
    %47 = arith.mulf %45, %45 : vector<16x128xf32>
    %48 = arith.mulf %40, %45 : vector<16x128xf32>
    %c0_31 = arith.constant 0 : index
    %c1280 = arith.constant 1280 : index
    %49 = vector.load %arg6[%c0_31, %c1280] : memref<16x2560xf32, #tpu.memory_space<vmem>>, vector<16x128xf32>
    tpu.vector_store %arg6[%c0_31, %c1280], %40 {strides = array<i32>} : memref<16x2560xf32, #tpu.memory_space<vmem>>, vector<16x128xf32>,
    %c0_32 = arith.constant 0 : index
    %c1408 = arith.constant 1408 : index
    %50 = vector.load %arg6[%c0_32, %c1408] : memref<16x2560xf32, #tpu.memory_space<vmem>>, vector<16x128xf32>
    tpu.vector_store %arg6[%c0_32, %c1408], %45 {strides = array<i32>} : memref<16x2560xf32, #tpu.memory_space<vmem>>, vector<16x128xf32>,
    %c0_33 = arith.constant 0 : index
    %c1536 = arith.constant 1536 : index
    %51 = vector.load %arg6[%c0_33, %c1536] : memref<16x2560xf32, #tpu.memory_space<vmem>>, vector<16x128xf32>
    tpu.vector_store %arg6[%c0_33, %c1536], %46 {strides = array<i32>} : memref<16x2560xf32, #tpu.memory_space<vmem>>, vector<16x128xf32>,
    %c0_34 = arith.constant 0 : index
    %c1664 = arith.constant 1664 : index
    %52 = vector.load %arg6[%c0_34, %c1664] : memref<16x2560xf32, #tpu.memory_space<vmem>>, vector<16x128xf32>
    tpu.vector_store %arg6[%c0_34, %c1664], %47 {strides = array<i32>} : memref<16x2560xf32, #tpu.memory_space<vmem>>, vector<16x128xf32>,
    %c0_35 = arith.constant 0 : index
    %c1792 = arith.constant 1792 : index
    %53 = vector.load %arg6[%c0_35, %c1792] : memref<16x2560xf32, #tpu.memory_space<vmem>>, vector<16x128xf32>
    tpu.vector_store %arg6[%c0_35, %c1792], %48 {strides = array<i32>} : memref<16x2560xf32, #tpu.memory_space<vmem>>, vector<16x128xf32>,
    %c3 = arith.constant 3 : index
    %c0_36 = arith.constant 0 : index
    %c0_37 = arith.constant 0 : index
    %54 = vector.load %arg1[%c3, %c0_36, %c0_37] : memref<4x16x128xf32, #tpu.memory_space<vmem>>, vector<1x16x128xf32>
    %55 = vector.shape_cast %54 : vector<1x16x128xf32> to vector<16x128xf32>
    %cst_38 = arith.constant 2.550000e+02 : f32
    %56 = vector.broadcast %cst_38 : f32 to vector<16x128xf32>
    %57 = arith.mulf %55, %56 : vector<16x128xf32>
    %58 = math.floor %57 : vector<16x128xf32>
    %c3_39 = arith.constant 3 : index
    %c0_40 = arith.constant 0 : index
    %c0_41 = arith.constant 0 : index
    %59 = vector.load %arg2[%c3_39, %c0_40, %c0_41] : memref<4x16x128xf32, #tpu.memory_space<vmem>>, vector<1x16x128xf32>
    %60 = vector.shape_cast %59 : vector<1x16x128xf32> to vector<16x128xf32>
    %cst_42 = arith.constant 2.550000e+02 : f32
    %61 = vector.broadcast %cst_42 : f32 to vector<16x128xf32>
    %62 = arith.mulf %60, %61 : vector<16x128xf32>
    %63 = math.floor %62 : vector<16x128xf32>
    %64 = arith.mulf %58, %58 : vector<16x128xf32>
    %65 = arith.mulf %63, %63 : vector<16x128xf32>
    %66 = arith.mulf %58, %63 : vector<16x128xf32>
    %c0_43 = arith.constant 0 : index
    %c1920 = arith.constant 1920 : index
    %67 = vector.load %arg6[%c0_43, %c1920] : memref<16x2560xf32, #tpu.memory_space<vmem>>, vector<16x128xf32>
    tpu.vector_store %arg6[%c0_43, %c1920], %58 {strides = array<i32>} : memref<16x2560xf32, #tpu.memory_space<vmem>>, vector<16x128xf32>,
    %c0_44 = arith.constant 0 : index
    %c2048 = arith.constant 2048 : index
    %68 = vector.load %arg6[%c0_44, %c2048] : memref<16x2560xf32, #tpu.memory_space<vmem>>, vector<16x128xf32>
    tpu.vector_store %arg6[%c0_44, %c2048], %63 {strides = array<i32>} : memref<16x2560xf32, #tpu.memory_space<vmem>>, vector<16x128xf32>,
    %c0_45 = arith.constant 0 : index
    %c2176 = arith.constant 2176 : index
    %69 = vector.load %arg6[%c0_45, %c2176] : memref<16x2560xf32, #tpu.memory_space<vmem>>, vector<16x128xf32>
    tpu.vector_store %arg6[%c0_45, %c2176], %64 {strides = array<i32>} : memref<16x2560xf32, #tpu.memory_space<vmem>>, vector<16x128xf32>,
    %c0_46 = arith.constant 0 : index
    %c2304 = arith.constant 2304 : index
    %70 = vector.load %arg6[%c0_46, %c2304] : memref<16x2560xf32, #tpu.memory_space<vmem>>, vector<16x128xf32>
    tpu.vector_store %arg6[%c0_46, %c2304], %65 {strides = array<i32>} : memref<16x2560xf32, #tpu.memory_space<vmem>>, vector<16x128xf32>,
    %c0_47 = arith.constant 0 : index
    %c2432 = arith.constant 2432 : index
    %71 = vector.load %arg6[%c0_47, %c2432] : memref<16x2560xf32, #tpu.memory_space<vmem>>, vector<16x128xf32>
    tpu.vector_store %arg6[%c0_47, %c2432], %66 {strides = array<i32>} : memref<16x2560xf32, #tpu.memory_space<vmem>>, vector<16x128xf32>,
    %c0_48 = arith.constant 0 : index
    %c0_49 = arith.constant 0 : index
    %72 = vector.load %arg3[%c0_48, %c0_49] : memref<8x16xf32, #tpu.memory_space<vmem>>, vector<8x16xf32>
    %c0_50 = arith.constant 0 : index
    %c0_51 = arith.constant 0 : index
    %73 = vector.load %arg6[%c0_50, %c0_51] : memref<16x2560xf32, #tpu.memory_space<vmem>>, vector<16x2560xf32>
    %cst_52 = arith.constant dense<0.000000e+00> : vector<8x2560xf32>
    %74 = tpu.matmul %72, %73, %cst_52 {dimension_numbers = #tpu.dot_dimension_numbers<[1], [0], [0], [1], [0, 0, 1, 1], [], []>} : vector<8x16xf32>, vector<16x2560xf32>, vector<8x2560xf32> -> vector<8x2560xf32>
    %75 = tpu.iota {dimensions = array<i32: 0>} : vector<8x128xi32>
    %76 = tpu.iota {dimensions = array<i32: 1>} : vector<8x128xi32>
    %c6_i32 = arith.constant 6 : i32
    %77 = vector.broadcast %c6_i32 : i32 to vector<8x128xi32>
    %78 = arith.cmpi slt, %75, %77 : vector<8x128xi32>
    %c6_i32_53 = arith.constant 6 : i32
    %79 = vector.broadcast %c6_i32_53 : i32 to vector<8x128xi32>
    %80 = arith.cmpi slt, %76, %79 : vector<8x128xi32>
    %81 = arith.andi %78, %80 : vector<8x128xi1>
    %c0_54 = arith.constant 0 : index
    %c0_55 = arith.constant 0 : index
    %82 = vector.load %arg4[%c0_54, %c0_55] : memref<128x128xf32, #tpu.memory_space<vmem>>, vector<128x128xf32>
    %cst_56 = arith.constant 0.000000e+00 : f32
    %83 = vector.broadcast %cst_56 : f32 to vector<8x128xf32>
    %84 = vector.extract_strided_slice %74 {offsets = [0, 0], sizes = [8, 128], strides = [1, 1]} : vector<8x2560xf32> to vector<8x128xf32>
    %cst_57 = arith.constant dense<0.000000e+00> : vector<8x128xf32>
    %85 = tpu.matmul %84, %82, %cst_57 {dimension_numbers = #tpu.dot_dimension_numbers<[1], [0], [0], [1], [0, 0, 1, 1], [], []>} : vector<8x128xf32>, vector<128x128xf32>, vector<8x128xf32> -> vector<8x128xf32>
    %86 = vector.extract_strided_slice %74 {offsets = [0, 128], sizes = [8, 128], strides = [1, 1]} : vector<8x2560xf32> to vector<8x128xf32>
    %cst_58 = arith.constant dense<0.000000e+00> : vector<8x128xf32>
    %87 = tpu.matmul %86, %82, %cst_58 {dimension_numbers = #tpu.dot_dimension_numbers<[1], [0], [0], [1], [0, 0, 1, 1], [], []>} : vector<8x128xf32>, vector<128x128xf32>, vector<8x128xf32> -> vector<8x128xf32>
    %88 = vector.extract_strided_slice %74 {offsets = [0, 256], sizes = [8, 128], strides = [1, 1]} : vector<8x2560xf32> to vector<8x128xf32>
    %cst_59 = arith.constant dense<0.000000e+00> : vector<8x128xf32>
    %89 = tpu.matmul %88, %82, %cst_59 {dimension_numbers = #tpu.dot_dimension_numbers<[1], [0], [0], [1], [0, 0, 1, 1], [], []>} : vector<8x128xf32>, vector<128x128xf32>, vector<8x128xf32> -> vector<8x128xf32>
    %90 = vector.extract_strided_slice %74 {offsets = [0, 384], sizes = [8, 128], strides = [1, 1]} : vector<8x2560xf32> to vector<8x128xf32>
    %cst_60 = arith.constant dense<0.000000e+00> : vector<8x128xf32>
    %91 = tpu.matmul %90, %82, %cst_60 {dimension_numbers = #tpu.dot_dimension_numbers<[1], [0], [0], [1], [0, 0, 1, 1], [], []>} : vector<8x128xf32>, vector<128x128xf32>, vector<8x128xf32> -> vector<8x128xf32>
    %92 = vector.extract_strided_slice %74 {offsets = [0, 512], sizes = [8, 128], strides = [1, 1]} : vector<8x2560xf32> to vector<8x128xf32>
    %cst_61 = arith.constant dense<0.000000e+00> : vector<8x128xf32>
    %93 = tpu.matmul %92, %82, %cst_61 {dimension_numbers = #tpu.dot_dimension_numbers<[1], [0], [0], [1], [0, 0, 1, 1], [], []>} : vector<8x128xf32>, vector<128x128xf32>, vector<8x128xf32> -> vector<8x128xf32>
    %94 = arith.mulf %85, %85 : vector<8x128xf32>
    %95 = arith.mulf %87, %87 : vector<8x128xf32>
    %96 = arith.mulf %85, %87 : vector<8x128xf32>
    %97 = arith.subf %89, %94 : vector<8x128xf32>
    %98 = arith.subf %91, %95 : vector<8x128xf32>
    %99 = arith.subf %93, %96 : vector<8x128xf32>
    %cst_62 = arith.constant 2.000000e+00 : f32
    %100 = vector.broadcast %cst_62 : f32 to vector<8x128xf32>
    %101 = arith.mulf %100, %96 : vector<8x128xf32>
    %cst_63 = arith.constant 6.502500e+00 : f32
    %102 = vector.broadcast %cst_63 : f32 to vector<8x128xf32>
    %103 = arith.addf %101, %102 : vector<8x128xf32>
    %cst_64 = arith.constant 2.000000e+00 : f32
    %104 = vector.broadcast %cst_64 : f32 to vector<8x128xf32>
    %105 = arith.mulf %104, %99 : vector<8x128xf32>
    %cst_65 = arith.constant 5.852250e+01 : f32
    %106 = vector.broadcast %cst_65 : f32 to vector<8x128xf32>
    %107 = arith.addf %105, %106 : vector<8x128xf32>
    %108 = arith.mulf %103, %107 : vector<8x128xf32>
    %109 = arith.addf %94, %95 : vector<8x128xf32>
    %cst_66 = arith.constant 6.502500e+00 : f32
    %110 = vector.broadcast %cst_66 : f32 to vector<8x128xf32>
    %111 = arith.addf %109, %110 : vector<8x128xf32>
    %112 = arith.addf %97, %98 : vector<8x128xf32>
    %cst_67 = arith.constant 5.852250e+01 : f32
    %113 = vector.broadcast %cst_67 : f32 to vector<8x128xf32>
    %114 = arith.addf %112, %113 : vector<8x128xf32>
    %115 = arith.mulf %111, %114 : vector<8x128xf32>
    %116 = arith.divf %108, %115 : vector<8x128xf32>
    %cst_68 = arith.constant 0.000000e+00 : f32
    %117 = vector.broadcast %cst_68 : f32 to vector<8x128xf32>
    %118 = arith.select %81, %116, %117 : vector<8x128xi1>, vector<8x128xf32>
    %119 = arith.addf %83, %118 : vector<8x128xf32>
    %120 = vector.extract_strided_slice %74 {offsets = [0, 640], sizes = [8, 128], strides = [1, 1]} : vector<8x2560xf32> to vector<8x128xf32>
    %cst_69 = arith.constant dense<0.000000e+00> : vector<8x128xf32>
    %121 = tpu.matmul %120, %82, %cst_69 {dimension_numbers = #tpu.dot_dimension_numbers<[1], [0], [0], [1], [0, 0, 1, 1], [], []>} : vector<8x128xf32>, vector<128x128xf32>, vector<8x128xf32> -> vector<8x128xf32>
    %122 = vector.extract_strided_slice %74 {offsets = [0, 768], sizes = [8, 128], strides = [1, 1]} : vector<8x2560xf32> to vector<8x128xf32>
    %cst_70 = arith.constant dense<0.000000e+00> : vector<8x128xf32>
    %123 = tpu.matmul %122, %82, %cst_70 {dimension_numbers = #tpu.dot_dimension_numbers<[1], [0], [0], [1], [0, 0, 1, 1], [], []>} : vector<8x128xf32>, vector<128x128xf32>, vector<8x128xf32> -> vector<8x128xf32>
    %124 = vector.extract_strided_slice %74 {offsets = [0, 896], sizes = [8, 128], strides = [1, 1]} : vector<8x2560xf32> to vector<8x128xf32>
    %cst_71 = arith.constant dense<0.000000e+00> : vector<8x128xf32>
    %125 = tpu.matmul %124, %82, %cst_71 {dimension_numbers = #tpu.dot_dimension_numbers<[1], [0], [0], [1], [0, 0, 1, 1], [], []>} : vector<8x128xf32>, vector<128x128xf32>, vector<8x128xf32> -> vector<8x128xf32>
    %126 = vector.extract_strided_slice %74 {offsets = [0, 1024], sizes = [8, 128], strides = [1, 1]} : vector<8x2560xf32> to vector<8x128xf32>
    %cst_72 = arith.constant dense<0.000000e+00> : vector<8x128xf32>
    %127 = tpu.matmul %126, %82, %cst_72 {dimension_numbers = #tpu.dot_dimension_numbers<[1], [0], [0], [1], [0, 0, 1, 1], [], []>} : vector<8x128xf32>, vector<128x128xf32>, vector<8x128xf32> -> vector<8x128xf32>
    %128 = vector.extract_strided_slice %74 {offsets = [0, 1152], sizes = [8, 128], strides = [1, 1]} : vector<8x2560xf32> to vector<8x128xf32>
    %cst_73 = arith.constant dense<0.000000e+00> : vector<8x128xf32>
    %129 = tpu.matmul %128, %82, %cst_73 {dimension_numbers = #tpu.dot_dimension_numbers<[1], [0], [0], [1], [0, 0, 1, 1], [], []>} : vector<8x128xf32>, vector<128x128xf32>, vector<8x128xf32> -> vector<8x128xf32>
    %130 = arith.mulf %121, %121 : vector<8x128xf32>
    %131 = arith.mulf %123, %123 : vector<8x128xf32>
    %132 = arith.mulf %121, %123 : vector<8x128xf32>
    %133 = arith.subf %125, %130 : vector<8x128xf32>
    %134 = arith.subf %127, %131 : vector<8x128xf32>
    %135 = arith.subf %129, %132 : vector<8x128xf32>
    %cst_74 = arith.constant 2.000000e+00 : f32
    %136 = vector.broadcast %cst_74 : f32 to vector<8x128xf32>
    %137 = arith.mulf %136, %132 : vector<8x128xf32>
    %cst_75 = arith.constant 6.502500e+00 : f32
    %138 = vector.broadcast %cst_75 : f32 to vector<8x128xf32>
    %139 = arith.addf %137, %138 : vector<8x128xf32>
    %cst_76 = arith.constant 2.000000e+00 : f32
    %140 = vector.broadcast %cst_76 : f32 to vector<8x128xf32>
    %141 = arith.mulf %140, %135 : vector<8x128xf32>
    %cst_77 = arith.constant 5.852250e+01 : f32
    %142 = vector.broadcast %cst_77 : f32 to vector<8x128xf32>
    %143 = arith.addf %141, %142 : vector<8x128xf32>
    %144 = arith.mulf %139, %143 : vector<8x128xf32>
    %145 = arith.addf %130, %131 : vector<8x128xf32>
    %cst_78 = arith.constant 6.502500e+00 : f32
    %146 = vector.broadcast %cst_78 : f32 to vector<8x128xf32>
    %147 = arith.addf %145, %146 : vector<8x128xf32>
    %148 = arith.addf %133, %134 : vector<8x128xf32>
    %cst_79 = arith.constant 5.852250e+01 : f32
    %149 = vector.broadcast %cst_79 : f32 to vector<8x128xf32>
    %150 = arith.addf %148, %149 : vector<8x128xf32>
    %151 = arith.mulf %147, %150 : vector<8x128xf32>
    %152 = arith.divf %144, %151 : vector<8x128xf32>
    %cst_80 = arith.constant 0.000000e+00 : f32
    %153 = vector.broadcast %cst_80 : f32 to vector<8x128xf32>
    %154 = arith.select %81, %152, %153 : vector<8x128xi1>, vector<8x128xf32>
    %155 = arith.addf %119, %154 : vector<8x128xf32>
    %156 = vector.extract_strided_slice %74 {offsets = [0, 1280], sizes = [8, 128], strides = [1, 1]} : vector<8x2560xf32> to vector<8x128xf32>
    %cst_81 = arith.constant dense<0.000000e+00> : vector<8x128xf32>
    %157 = tpu.matmul %156, %82, %cst_81 {dimension_numbers = #tpu.dot_dimension_numbers<[1], [0], [0], [1], [0, 0, 1, 1], [], []>} : vector<8x128xf32>, vector<128x128xf32>, vector<8x128xf32> -> vector<8x128xf32>
    %158 = vector.extract_strided_slice %74 {offsets = [0, 1408], sizes = [8, 128], strides = [1, 1]} : vector<8x2560xf32> to vector<8x128xf32>
    %cst_82 = arith.constant dense<0.000000e+00> : vector<8x128xf32>
    %159 = tpu.matmul %158, %82, %cst_82 {dimension_numbers = #tpu.dot_dimension_numbers<[1], [0], [0], [1], [0, 0, 1, 1], [], []>} : vector<8x128xf32>, vector<128x128xf32>, vector<8x128xf32> -> vector<8x128xf32>
    %160 = vector.extract_strided_slice %74 {offsets = [0, 1536], sizes = [8, 128], strides = [1, 1]} : vector<8x2560xf32> to vector<8x128xf32>
    %cst_83 = arith.constant dense<0.000000e+00> : vector<8x128xf32>
    %161 = tpu.matmul %160, %82, %cst_83 {dimension_numbers = #tpu.dot_dimension_numbers<[1], [0], [0], [1], [0, 0, 1, 1], [], []>} : vector<8x128xf32>, vector<128x128xf32>, vector<8x128xf32> -> vector<8x128xf32>
    %162 = vector.extract_strided_slice %74 {offsets = [0, 1664], sizes = [8, 128], strides = [1, 1]} : vector<8x2560xf32> to vector<8x128xf32>
    %cst_84 = arith.constant dense<0.000000e+00> : vector<8x128xf32>
    %163 = tpu.matmul %162, %82, %cst_84 {dimension_numbers = #tpu.dot_dimension_numbers<[1], [0], [0], [1], [0, 0, 1, 1], [], []>} : vector<8x128xf32>, vector<128x128xf32>, vector<8x128xf32> -> vector<8x128xf32>
    %164 = vector.extract_strided_slice %74 {offsets = [0, 1792], sizes = [8, 128], strides = [1, 1]} : vector<8x2560xf32> to vector<8x128xf32>
    %cst_85 = arith.constant dense<0.000000e+00> : vector<8x128xf32>
    %165 = tpu.matmul %164, %82, %cst_85 {dimension_numbers = #tpu.dot_dimension_numbers<[1], [0], [0], [1], [0, 0, 1, 1], [], []>} : vector<8x128xf32>, vector<128x128xf32>, vector<8x128xf32> -> vector<8x128xf32>
    %166 = arith.mulf %157, %157 : vector<8x128xf32>
    %167 = arith.mulf %159, %159 : vector<8x128xf32>
    %168 = arith.mulf %157, %159 : vector<8x128xf32>
    %169 = arith.subf %161, %166 : vector<8x128xf32>
    %170 = arith.subf %163, %167 : vector<8x128xf32>
    %171 = arith.subf %165, %168 : vector<8x128xf32>
    %cst_86 = arith.constant 2.000000e+00 : f32
    %172 = vector.broadcast %cst_86 : f32 to vector<8x128xf32>
    %173 = arith.mulf %172, %168 : vector<8x128xf32>
    %cst_87 = arith.constant 6.502500e+00 : f32
    %174 = vector.broadcast %cst_87 : f32 to vector<8x128xf32>
    %175 = arith.addf %173, %174 : vector<8x128xf32>
    %cst_88 = arith.constant 2.000000e+00 : f32
    %176 = vector.broadcast %cst_88 : f32 to vector<8x128xf32>
    %177 = arith.mulf %176, %171 : vector<8x128xf32>
    %cst_89 = arith.constant 5.852250e+01 : f32
    %178 = vector.broadcast %cst_89 : f32 to vector<8x128xf32>
    %179 = arith.addf %177, %178 : vector<8x128xf32>
    %180 = arith.mulf %175, %179 : vector<8x128xf32>
    %181 = arith.addf %166, %167 : vector<8x128xf32>
    %cst_90 = arith.constant 6.502500e+00 : f32
    %182 = vector.broadcast %cst_90 : f32 to vector<8x128xf32>
    %183 = arith.addf %181, %182 : vector<8x128xf32>
    %184 = arith.addf %169, %170 : vector<8x128xf32>
    %cst_91 = arith.constant 5.852250e+01 : f32
    %185 = vector.broadcast %cst_91 : f32 to vector<8x128xf32>
    %186 = arith.addf %184, %185 : vector<8x128xf32>
    %187 = arith.mulf %183, %186 : vector<8x128xf32>
    %188 = arith.divf %180, %187 : vector<8x128xf32>
    %cst_92 = arith.constant 0.000000e+00 : f32
    %189 = vector.broadcast %cst_92 : f32 to vector<8x128xf32>
    %190 = arith.select %81, %188, %189 : vector<8x128xi1>, vector<8x128xf32>
    %191 = arith.addf %155, %190 : vector<8x128xf32>
    %192 = vector.extract_strided_slice %74 {offsets = [0, 1920], sizes = [8, 128], strides = [1, 1]} : vector<8x2560xf32> to vector<8x128xf32>
    %cst_93 = arith.constant dense<0.000000e+00> : vector<8x128xf32>
    %193 = tpu.matmul %192, %82, %cst_93 {dimension_numbers = #tpu.dot_dimension_numbers<[1], [0], [0], [1], [0, 0, 1, 1], [], []>} : vector<8x128xf32>, vector<128x128xf32>, vector<8x128xf32> -> vector<8x128xf32>
    %194 = vector.extract_strided_slice %74 {offsets = [0, 2048], sizes = [8, 128], strides = [1, 1]} : vector<8x2560xf32> to vector<8x128xf32>
    %cst_94 = arith.constant dense<0.000000e+00> : vector<8x128xf32>
    %195 = tpu.matmul %194, %82, %cst_94 {dimension_numbers = #tpu.dot_dimension_numbers<[1], [0], [0], [1], [0, 0, 1, 1], [], []>} : vector<8x128xf32>, vector<128x128xf32>, vector<8x128xf32> -> vector<8x128xf32>
    %196 = vector.extract_strided_slice %74 {offsets = [0, 2176], sizes = [8, 128], strides = [1, 1]} : vector<8x2560xf32> to vector<8x128xf32>
    %cst_95 = arith.constant dense<0.000000e+00> : vector<8x128xf32>
    %197 = tpu.matmul %196, %82, %cst_95 {dimension_numbers = #tpu.dot_dimension_numbers<[1], [0], [0], [1], [0, 0, 1, 1], [], []>} : vector<8x128xf32>, vector<128x128xf32>, vector<8x128xf32> -> vector<8x128xf32>
    %198 = vector.extract_strided_slice %74 {offsets = [0, 2304], sizes = [8, 128], strides = [1, 1]} : vector<8x2560xf32> to vector<8x128xf32>
    %cst_96 = arith.constant dense<0.000000e+00> : vector<8x128xf32>
    %199 = tpu.matmul %198, %82, %cst_96 {dimension_numbers = #tpu.dot_dimension_numbers<[1], [0], [0], [1], [0, 0, 1, 1], [], []>} : vector<8x128xf32>, vector<128x128xf32>, vector<8x128xf32> -> vector<8x128xf32>
    %200 = vector.extract_strided_slice %74 {offsets = [0, 2432], sizes = [8, 128], strides = [1, 1]} : vector<8x2560xf32> to vector<8x128xf32>
    %cst_97 = arith.constant dense<0.000000e+00> : vector<8x128xf32>
    %201 = tpu.matmul %200, %82, %cst_97 {dimension_numbers = #tpu.dot_dimension_numbers<[1], [0], [0], [1], [0, 0, 1, 1], [], []>} : vector<8x128xf32>, vector<128x128xf32>, vector<8x128xf32> -> vector<8x128xf32>
    %202 = arith.mulf %193, %193 : vector<8x128xf32>
    %203 = arith.mulf %195, %195 : vector<8x128xf32>
    %204 = arith.mulf %193, %195 : vector<8x128xf32>
    %205 = arith.subf %197, %202 : vector<8x128xf32>
    %206 = arith.subf %199, %203 : vector<8x128xf32>
    %207 = arith.subf %201, %204 : vector<8x128xf32>
    %cst_98 = arith.constant 2.000000e+00 : f32
    %208 = vector.broadcast %cst_98 : f32 to vector<8x128xf32>
    %209 = arith.mulf %208, %204 : vector<8x128xf32>
    %cst_99 = arith.constant 6.502500e+00 : f32
    %210 = vector.broadcast %cst_99 : f32 to vector<8x128xf32>
    %211 = arith.addf %209, %210 : vector<8x128xf32>
    %cst_100 = arith.constant 2.000000e+00 : f32
    %212 = vector.broadcast %cst_100 : f32 to vector<8x128xf32>
    %213 = arith.mulf %212, %207 : vector<8x128xf32>
    %cst_101 = arith.constant 5.852250e+01 : f32
    %214 = vector.broadcast %cst_101 : f32 to vector<8x128xf32>
    %215 = arith.addf %213, %214 : vector<8x128xf32>
    %216 = arith.mulf %211, %215 : vector<8x128xf32>
    %217 = arith.addf %202, %203 : vector<8x128xf32>
    %cst_102 = arith.constant 6.502500e+00 : f32
    %218 = vector.broadcast %cst_102 : f32 to vector<8x128xf32>
    %219 = arith.addf %217, %218 : vector<8x128xf32>
    %220 = arith.addf %205, %206 : vector<8x128xf32>
    %cst_103 = arith.constant 5.852250e+01 : f32
    %221 = vector.broadcast %cst_103 : f32 to vector<8x128xf32>
    %222 = arith.addf %220, %221 : vector<8x128xf32>
    %223 = arith.mulf %219, %222 : vector<8x128xf32>
    %224 = arith.divf %216, %223 : vector<8x128xf32>
    %cst_104 = arith.constant 0.000000e+00 : f32
    %225 = vector.broadcast %cst_104 : f32 to vector<8x128xf32>
    %226 = arith.select %81, %224, %225 : vector<8x128xi1>, vector<8x128xf32>
    %227 = arith.addf %191, %226 : vector<8x128xf32>
    %c0_105 = arith.constant 0 : index
    %c0_106 = arith.constant 0 : index
    %c0_107 = arith.constant 0 : index
    %228 = vector.load %arg5[%c0_105, %c0_106, %c0_107] : memref<1x8x128xf32, #tpu.memory_space<vmem>>, vector<1x8x128xf32>
    %229 = vector.shape_cast %228 : vector<1x8x128xf32> to vector<8x128xf32>
    %230 = vector.shape_cast %227 : vector<8x128xf32> to vector<1x8x128xf32>
    tpu.vector_store %arg5[%c0_105, %c0_106, %c0_107], %230 {strides = array<i32>} : memref<1x8x128xf32, #tpu.memory_space<vmem>>, vector<1x8x128xf32>,
    return
  }
  func.func @transform_0(%arg0: i32) -> (i32, i32, i32) {
    %c0_i32 = arith.constant 0 : i32
    %c0_i32_0 = arith.constant 0 : i32
    %c0_i32_1 = arith.constant 0 : i32
    return %arg0, %c0_i32, %c0_i32_0 : i32, i32, i32
  }
  func.func @transform_1(%arg0: i32) -> (i32, i32, i32) {
    %c0_i32 = arith.constant 0 : i32
    %c0_i32_0 = arith.constant 0 : i32
    %c0_i32_1 = arith.constant 0 : i32
    return %arg0, %c0_i32, %c0_i32_0 : i32, i32, i32
  }
  func.func @transform_2(%arg0: i32) -> (i32, i32) {
    %c0_i32 = arith.constant 0 : i32
    %c0_i32_0 = arith.constant 0 : i32
    %c0_i32_1 = arith.constant 0 : i32
    return %c0_i32, %c0_i32_0 : i32, i32
  }
  func.func @transform_3(%arg0: i32) -> (i32, i32) {
    %c0_i32 = arith.constant 0 : i32
    %c0_i32_0 = arith.constant 0 : i32
    %c0_i32_1 = arith.constant 0 : i32
    return %c0_i32, %c0_i32_0 : i32, i32
  }
  func.func @transform_4(%arg0: i32) -> (i32, i32, i32) {
    %c0_i32 = arith.constant 0 : i32
    %c0_i32_0 = arith.constant 0 : i32
    %c0_i32_1 = arith.constant 0 : i32
    return %arg0, %c0_i32, %c0_i32_0 : i32, i32, i32
  }
}

</mosaic_0001>

<bundles_post_ra>
// kernel: _ssim_call.1
= control target key start
LH: loop header
LB: loop body
LE: loop exit
PB: predicated region body
PF: predicated region fallthrough
CT: control target
= control target key end

     0   :  { %v3991_v3 = vmov 0.0   ;;  %vm176_vm0 = vcmask 130048   ;;  %vm3993_vm1 = vmmov 0   ;;  %s4593_s1 = inlined_call_operand.vmem [shape: f32[4,16,128], index: 1, kind: input, shape index: {}]   ;;  %s4594_s0 = inlined_call_operand.vmem [shape: f32[4,16,128], index: 0, kind: input, shape index: {}]   ;;  %s4595_s2 = inlined_call_operand.vmem [shape: f32[8,16], index: 2, kind: input, shape index: {}]   ;;  %s4596_s3 = inlined_call_operand.vmem [shape: f32[128,128], index: 3, kind: input, shape index: {}]   ;;  %s4597_s4 = inlined_call_operand.vmem [shape: f32[1,8,128], index: 4, kind: output, shape index: {}]  }
   0x1   :  { %v23_v0 = vld [vmem:[%s4593_s1] sm:$0xff]  ;;  %v24_v1 = vld [vmem:[%s4593_s1 + $0x8] sm:$0xff]  ;;  %244 = vmatprep.mubr.f32.mxu0 %v3991_v3  ;;  %315 = vmatprep.mubr.f32.mxu1 %v3991_v3  ;;  %v2398_v8 = vld [vmem:[%s4594_s0 + $0x10] sm:$0xff] }
   0x2   :  { %v17_v2 = vld [vmem:[%s4594_s0] sm:$0xff]  ;;  %v25_v4 = vmul.f32 255.0, %v23_v0  ;;  %v26_v5 = vmul.f32 255.0, %v24_v1  ;;  %v18_v6 = vld [vmem:[%s4594_s0 + $0x8] sm:$0xff]  ;;  %v2399_v10 = vld [vmem:[%s4594_s0 + $0x18] sm:$0xff]  ;;  %v48_v11 = vmul.f32 255.0, %v2398_v8 }
   0x3   :  { %v19_v7 = vmul.f32 255.0, %v17_v2  ;;  %v20_v9 = vmul.f32 255.0, %v18_v6  ;;  %v2400_v12 = vld [vmem:[%s4593_s1 + $0x10] sm:$0xff]  ;;  %v2401_v13 = vld [vmem:[%s4593_s1 + $0x18] sm:$0xff]  ;;  %v49_v17 = vmul.f32 255.0, %v2399_v10  ;;  %v2404_v30 = vld [vmem:[%s4593_s1 + $0x20] sm:$0xff] }
   0x4   :  { %v27_v14 = vfloor.f32 %v25_v4  ;;  %v28_v15 = vfloor.f32 %v26_v5  ;;  %v50_v19 = vfloor.f32 %v48_v11  ;;  %v55_v20 = vmul.f32 255.0, %v2400_v12  ;;  %v2405_v35 = vld [vmem:[%s4593_s1 + $0x28] sm:$0xff]  ;;  %v4054_v36 = vld [vmem:[%s4595_s2] sm:$0xff]  ;;  %v2406_v47 = vld [vmem:[%s4594_s0 + $0x30] sm:$0xff] }
   0x5   :  { %v21_v16 = vfloor.f32 %v19_v7  ;;  %v22_v18 = vfloor.f32 %v20_v9  ;;  %v56_v21 = vmul.f32 255.0, %v2401_v13  ;;  %v51_v28 = vfloor.f32 %v49_v17  ;;  %v2402_v41 = vld [vmem:[%s4594_s0 + $0x20] sm:$0xff]  ;;  %v2403_v42 = vld [vmem:[%s4594_s0 + $0x28] sm:$0xff]  ;;  %v2407_v48 = vld [vmem:[%s4594_s0 + $0x38] sm:$0xff] }
   0x6   :  { %v3460_v22 = vpack.c.bf16 %v28_v15, %v27_v14  ;;  %v31_v23 = vmul.f32 %v27_v14, %v27_v14  ;;  %v32_v24 = vmul.f32 %v28_v15, %v28_v15  ;;  %v59_v33 = vmul.f32 %v50_v19, %v50_v19  ;;  %v2408_v61 = vld [vmem:[%s4593_s1 + $0x30] sm:$0xff]  ;;  %v2409_v2 = vld [vmem:[%s4593_s1 + $0x38] sm:$0xff] }
   0x7   :  { %v29_v25 = vmul.f32 %v21_v16, %v21_v16  ;;  %v3462_v26 = vpack.c.bf16 %v22_v18, %v21_v16  ;;  %v30_v27 = vmul.f32 %v22_v18, %v22_v18  ;;  %v33_v29 = vmul.f32 %v27_v14, %v21_v16 }
   0x8   :  { %3461 = vmatprep.subr.bf16.mxu0 %v3460_v22  ;;  %v3464_v31 = vpack.c.bf16 %v32_v24, %v31_v23  ;;  %v34_v32 = vmul.f32 %v28_v15, %v22_v18  ;;  %v57_v34 = vfloor.f32 %v55_v20  ;;  %v3468_v38 = vpack.c.bf16 %v51_v28, %v50_v19 }
   0x9   :  { %3463 = vmatpush1.bf16.msra.mxu0 %v3462_v26  ;;  %v3466_v37 = vpack.c.bf16 %v30_v27, %v29_v25  ;;  %v60_v39 = vmul.f32 %v51_v28, %v51_v28  ;;  %v58_v40 = vfloor.f32 %v56_v21  ;;  %v85_v46 = vmul.f32 255.0, %v2404_v30  ;;  %v898_v30 = vld [vmem:[%s4596_s3 + $0x8] sm:$0xff] }
   0xa   :  { %3465 = vmatprep.subr.bf16.mxu1 %v3464_v31  ;;  %v3470_v43 = vpack.c.bf16 %v34_v32, %v33_v29  ;;  %v63_v44 = vmul.f32 %v57_v34, %v50_v19  ;;  %v61_v45 = vmul.f32 %v57_v34, %v57_v34  ;;  %3469 = vmatprep.subr.bf16.mxu0 %v3468_v38  ;;  %v86_v52 = vmul.f32 255.0, %v2405_v35  ;;  %v897_v29 = vld [vmem:[%s4596_s3] sm:$0xff]  ;;  %v900_v35 = vld [vmem:[%s4596_s3 + $0x18] sm:$0xff] }
   0xb   :  { %3467 = vmatpush1.bf16.msra.mxu1 %v3466_v37  ;;  %v3472_v49 = vpack.c.bf16 %v60_v39, %v59_v33  ;;  %v3474_v50 = vpack.c.bf16 %v58_v40, %v57_v34  ;;  %v64_v51 = vmul.f32 %v58_v40, %v51_v28  ;;  %v62_v53 = vmul.f32 %v58_v40, %v58_v40  ;;  %v899_v34 = vld [vmem:[%s4596_s3 + $0x10] sm:$0xff]  ;;  %v901_v39 = vld [vmem:[%s4596_s3 + $0x20] sm:$0xff]  ;;  %v902_v40 = vld [vmem:[%s4596_s3 + $0x28] sm:$0xff] }
   0xc   :  { %2410 = vmatmul.mubr.msk.f32.vlgmr.msra.gmra.mrb[0].mxu0 %vm176_vm0, %v4054_v36  ;;  %v87_v54 = vfloor.f32 %v85_v46  ;;  %v78_v55 = vmul.f32 255.0, %v2402_v41  ;;  %v79_v56 = vmul.f32 255.0, %v2403_v42  ;;  %v88_v58 = vfloor.f32 %v86_v52  ;;  %v904_v42 = vld [vmem:[%s4596_s3 + $0x38] sm:$0xff] }
   0xd   :  { %3471 = vmatpush1.bf16.msra.mxu0 %v3470_v43  ;;  %386 = vmatprep.mubr.f32.mxu0 %v3991_v3  ;;  %v3476_v57 = vpack.c.bf16 %v64_v51, %v63_v44  ;;  %v108_v59 = vmul.f32 255.0, %v2406_v47  ;;  %v109_v60 = vmul.f32 255.0, %v2407_v48  ;;  %v3478_v62 = vpack.c.bf16 %v62_v53, %v61_v45  ;;  %v905_v44 = vld [vmem:[%s4596_s3 + $0x40] sm:$0xff]  ;;  %v906_v45 = vld [vmem:[%s4596_s3 + $0x48] sm:$0xff]  ;;  %v907_v47 = vld [vmem:[%s4596_s3 + $0x50] sm:$0xff] }
   0xe   :  { %2411 = vmatmul.mubr.msk.f32.vlgmr.msra.gmra.mrb[0].mxu1 %vm176_vm0, %v4054_v36  ;;  %3473 = vmatprep.subr.bf16.mxu1 %v3472_v49  ;;  %v80_v63 = vfloor.f32 %v78_v55  ;;  %v81_v0 = vfloor.f32 %v79_v56  ;;  %v91_v1 = vmul.f32 %v87_v54, %v87_v54  ;;  %v3480_v4 = vpack.c.bf16 %v88_v58, %v87_v54  ;;  %v908_v48 = vld [vmem:[%s4596_s3 + $0x58] sm:$0xff]  ;;  %v910_v51 = vld [vmem:[%s4596_s3 + $0x68] sm:$0xff]  ;;  %v911_v53 = vld [vmem:[%s4596_s3 + $0x70] sm:$0xff] }
   0xf   :  { %3475 = vmatpush1.bf16.msra.mxu1 %v3474_v50  ;;  %457 = vmatprep.mubr.f32.mxu1 %v3991_v3  ;;  %v92_v5 = vmul.f32 %v88_v58, %v88_v58  ;;  %v110_v6 = vfloor.f32 %v108_v59  ;;  %v111_v7 = vfloor.f32 %v109_v60  ;;  %v115_v11 = vmul.f32 255.0, %v2408_v61  ;;  %v909_v50 = vld [vmem:[%s4596_s3 + $0x60] sm:$0xff] }
  0x10   :  { %2412 = vmatmul.mubr.msk.f32.vlgmr.msra.gmra.mrb[2].mxu0 %vm176_vm0, %v4054_v36  ;;  %3477 = vmatprep.subr.bf16.mxu0 %v3476_v57  ;;  %v3482_v8 = vpack.c.bf16 %v81_v0, %v80_v63  ;;  %v89_v9 = vmul.f32 %v80_v63, %v80_v63  ;;  %v90_v10 = vmul.f32 %v81_v0, %v81_v0  ;;  %v116_v15 = vmul.f32 255.0, %v2409_v2 }
  0x11   :  { %3479 = vmatpush1.bf16.msra.mxu0 %v3478_v62  ;;  %528 = vmatprep.mubr.f32.mxu0 %v3991_v3  ;;  %v3484_v12 = vpack.c.bf16 %v92_v5, %v91_v1  ;;  %v3488_v13 = vpack.c.bf16 %v111_v7, %v110_v6  ;;  %v93_v14 = vmul.f32 %v87_v54, %v80_v63  ;;  %v117_v19 = vfloor.f32 %v115_v11  ;;  %v912_v54 = vld [vmem:[%s4596_s3 + $0x78] sm:$0xff] }
  0x12   :  { %2413 = vmatmul.mubr.msk.f32.vlgmr.msra.gmra.mrb[2].mxu1 %vm176_vm0, %v4054_v36  ;;  %3481 = vmatprep.subr.bf16.mxu1 %v3480_v4  ;;  %v3486_v16 = vpack.c.bf16 %v90_v10, %v89_v9  ;;  %v94_v17 = vmul.f32 %v88_v58, %v81_v0  ;;  %v119_v18 = vmul.f32 %v110_v6, %v110_v6  ;;  %v118_v21 = vfloor.f32 %v116_v15 }
  0x13   :  { %3483 = vmatpush1.bf16.msra.mxu1 %v3482_v8  ;;  %599 = vmatprep.mubr.f32.mxu1 %v3991_v3  ;;  %v120_v20 = vmul.f32 %v111_v7, %v111_v7  ;;  %v123_v23 = vmul.f32 %v117_v19, %v110_v6  ;;  %v121_v24 = vmul.f32 %v117_v19, %v117_v19  ;;  %v3992_v37 = vmov 0.0|0.0  }
  0x14   :  { %2414 = vmatmul.mubr.msk.f32.vlgmr.msra.gmra.mrb[4].mxu0 %vm176_vm0, %v4054_v36  ;;  %3485 = vmatprep.subr.bf16.mxu0 %v3484_v12  ;;  %v3490_v22 = vpack.c.bf16 %v94_v17, %v93_v14  ;;  %v3494_v26 = vpack.c.bf16 %v118_v21, %v117_v19  ;;  %v124_v27 = vmul.f32 %v118_v21, %v111_v7 }
  0x15   :  { %3487 = vmatpush1.bf16.msra.mxu0 %v3486_v16  ;;  %3489 = vmatprep.subr.bf16.mxu1 %v3488_v13  ;;  %v3492_v25 = vpack.c.bf16 %v120_v20, %v119_v18  ;;  %v122_v28 = vmul.f32 %v118_v21, %v118_v21  ;;  %v4100_v33 = vpack.c.bf16 %v898_v30, %v897_v29 }
  0x16   :  { %2415 = vmatmul.mubr.msk.f32.vlgmr.msra.gmra.mrb[4].mxu1 %vm176_vm0, %v4054_v36  ;;  %670 = vmatprep.mubr.f32.mxu0 %v3991_v3  ;;  %v3496_v31 = vpack.c.bf16 %v124_v27, %v123_v23  ;;  %v4117_v38 = vpack.c.bf16 %v900_v35, %v899_v34  ;;  %v4131_v41 = vpack.c.bf16 %v902_v40, %v901_v39 }
  0x17   :  { %3491 = vmatpush1.bf16.msra.mxu1 %v3490_v22  ;;  %3493 = vmatprep.subr.bf16.mxu0 %v3492_v25  ;;  %v3498_v32 = vpack.c.bf16 %v122_v28, %v121_v24  ;;  %v4155_v46 = vpack.c.bf16 %v906_v45, %v905_v44  ;;  %v4167_v49 = vpack.c.bf16 %v908_v48, %v907_v47 }
  0x18   :  { %2416 = vmatmul.mubr.msk.f32.vlgmr.msra.gmra.mrb[6].mxu0 %vm176_vm0, %v4054_v36  ;;  %741 = vmatprep.mubr.f32.mxu1 %v3991_v3  ;;  %v4179_v52 = vpack.c.bf16 %v910_v51, %v909_v50  ;;  %v4191_v55 = vpack.c.bf16 %v912_v54, %v911_v53 }
  0x19   :  { %3495 = vmatpush1.bf16.msra.mxu0 %v3494_v26  ;;  %3497 = vmatprep.subr.bf16.mxu1 %v3496_v31 }
  0x1a   :  { %2417 = vmatmul.mubr.msk.f32.vlgmr.msra.gmra.mrb[6].mxu1 %vm176_vm0, %v4054_v36  ;;  %812 = vmatprep.mubr.f32.mxu0 %v3991_v3 }
  0x1b   :  { %3499 = vmatpush1.bf16.msra.mxu1 %v3498_v32  ;;  %3500 = vmatprep.subr.bf16.mxu0 %v3992_v37 }
  0x1c   :  { %2418 = vmatmul.mubr.msk.f32.vlgmr.msra.gmra.mrb[8].mxu0 %vm176_vm0, %v4054_v36  ;;  %883 = vmatprep.mubr.f32.mxu1 %v3991_v3 }
  0x1d   :  { %3502 = vmatpush3.bf16.msra.mxu0 %v4100_v33  ;;  %3524 = vmatprep.subr.bf16.mxu1 %v3992_v37 }
  0x1e   :  { %2419 = vmatmul.mubr.msk.f32.vlgmr.msra.gmra.mrb[8].mxu1 %vm176_vm0, %v4054_v36  ;;  %3503 = vmatprep.subr.bf16.mxu0 %v3992_v37  ;;  %v903_v36 = vld [vmem:[%s4596_s3 + $0x30] sm:$0xff] }
  0x1f   :  { %3526 = vmatpush3.bf16.msra.mxu1 %v4100_v33  ;;  %v4143_v43 = vpack.c.bf16 %v904_v42, %v903_v36  ;;  %2792 = vmatprep.mubr.msk.f32.mxu0 %vm3993_vm1, %v3991_v3 }
  0x20   :  { %3527 = vmatprep.subr.bf16.mxu1 %v3992_v37  ;;  %2827 = vmatprep.mubr.msk.f32.mxu1 %vm3993_vm1, %v3991_v3 }
  0x21   :  { %3505 = vmatpush3.bf16.msra.mxu0 %v4117_v38 }
  0x22   :  { %3506 = vmatprep.subr.bf16.mxu0 %v3992_v37 }
  0x23   :  { %3529 = vmatpush3.bf16.msra.mxu1 %v4117_v38 }
  0x24   :  { %3530 = vmatprep.subr.bf16.mxu1 %v3992_v37 }
  0x25   :  { %3508 = vmatpush3.bf16.msra.mxu0 %v4131_v41 }
  0x26   :  { %3509 = vmatprep.subr.bf16.mxu0 %v3992_v37 }
  0x27   :  { %3532 = vmatpush3.bf16.msra.mxu1 %v4131_v41 }
  0x28   :  { %3533 = vmatprep.subr.bf16.mxu1 %v3992_v37 }
  0x29   :  { %3511 = vmatpush3.bf16.msra.mxu0 %v4143_v43 }
  0x2a   :  { %3512 = vmatprep.subr.bf16.mxu0 %v3992_v37 }
  0x2b   :  { %3535 = vmatpush3.bf16.msra.mxu1 %v4143_v43 }
  0x2c   :  { %3536 = vmatprep.subr.bf16.mxu1 %v3992_v37 }
  0x2d   :  { %3514 = vmatpush3.bf16.msra.mxu0 %v4155_v46 }
  0x2e   :  { %3515 = vmatprep.subr.bf16.mxu0 %v3992_v37 }
  0x2f   :  { %3538 = vmatpush3.bf16.msra.mxu1 %v4155_v46 }
  0x30   :  { %3539 = vmatprep.subr.bf16.mxu1 %v3992_v37 }
  0x31   :  { %3517 = vmatpush3.bf16.msra.mxu0 %v4167_v49 }
  0x32   :  { %3518 = vmatprep.subr.bf16.mxu0 %v3992_v37 }
  0x33   :  { %3541 = vmatpush3.bf16.msra.mxu1 %v4167_v49 }
  0x34   :  { %3542 = vmatprep.subr.bf16.mxu1 %v3992_v37 }
  0x35   :  { %3520 = vmatpush3.bf16.msra.mxu0 %v4179_v52 }
  0x36   :  { %3521 = vmatprep.subr.bf16.mxu0 %v3992_v37 }
  0x37   :  { %3544 = vmatpush3.bf16.msra.mxu1 %v4179_v52 }
  0x38   :  { %3545 = vmatprep.subr.bf16.mxu1 %v3992_v37 }
  0x39   :  { %3523 = vmatpush3.bf16.msra.mxu0 %v4191_v55 }
  0x3a   :  { %3548 = vmatprep.subr.bf16.mxu0 %v3992_v37 }
  0x3b   :  { %3547 = vmatpush3.bf16.msra.mxu1 %v4191_v55 }
  0x3c   :  { %3572 = vmatprep.subr.bf16.mxu1 %v3992_v37 }
  0xdf   :  { %v246_v56 = vpop.f32.mrb[0].mxu0 }
  0xe0   :  { %v248_v57 = vpop.f32.mrb[1].mxu0  ;;  %2793 = vmatmul.mubr.f32.vlgmr.msra.gmra.mrb[10].mxu0 %v246_v56 }
  0xe1   :  { %3550 = vmatpush3.bf16.msra.mxu0 %v4100_v33  ;;  %2828 = vmatmul.mubr.f32.vlgmr.msra.gmra.mrb[10].mxu1 %v248_v57  ;;  %v317_v58 = vpop.f32.mrb[0].mxu1 }
  0xe2   :  { %3574 = vmatpush3.bf16.msra.mxu1 %v4100_v33  ;;  %3551 = vmatprep.subr.bf16.mxu0 %v3992_v37  ;;  %v319_v59 = vpop.f32.mrb[1].mxu1 }
  0xe3   :  { %3575 = vmatprep.subr.bf16.mxu1 %v3992_v37  ;;  %2862 = vmatprep.mubr.msk.f32.mxu0 %vm3993_vm1, %v3991_v3  ;;  %v4210_v60 = vpop.f32.mrb[2].mxu0 }
  0xe4   :  { %2897 = vmatprep.mubr.msk.f32.mxu1 %vm3993_vm1, %v3991_v3  ;;  %v4214_v61 = vpop.f32.mrb[3].mxu0 }
  0xe5   :  { %3553 = vmatpush3.bf16.msra.mxu0 %v4117_v38  ;;  %v4217_v62 = vpop.f32.mrb[2].mxu1 }
  0xe6   :  { %3577 = vmatpush3.bf16.msra.mxu1 %v4117_v38  ;;  %3554 = vmatprep.subr.bf16.mxu0 %v3992_v37  ;;  %v4221_v63 = vpop.f32.mrb[3].mxu1 }
  0xe7   :  { %3578 = vmatprep.subr.bf16.mxu1 %v3992_v37  ;;  %v4224_v0 = vpop.f32.mrb[4].mxu0 }
  0xe8   :  { %v4226_v1 = vpop.f32.mrb[5].mxu0 }
  0xe9   :  { %3556 = vmatpush3.bf16.msra.mxu0 %v4131_v41  ;;  %v4251_v2 = vpop.f32.mrb[4].mxu1 }
  0xea   :  { %3580 = vmatpush3.bf16.msra.mxu1 %v4131_v41  ;;  %3557 = vmatprep.subr.bf16.mxu0 %v3992_v37  ;;  %v4254_v4 = vpop.f32.mrb[5].mxu1 }
  0xeb   :  { %3581 = vmatprep.subr.bf16.mxu1 %v3992_v37  ;;  %v4275_v5 = vpop.f32.mrb[6].mxu0 }
  0xec   :  { %v4278_v6 = vpop.f32.mrb[7].mxu0 }
  0xed   :  { %3559 = vmatpush3.bf16.msra.mxu0 %v4143_v43  ;;  %v4293_v9 = vpop.f32.mrb[6].mxu1 }
  0xee   :  { %3583 = vmatpush3.bf16.msra.mxu1 %v4143_v43  ;;  %3560 = vmatprep.subr.bf16.mxu0 %v3992_v37  ;;  %v4297_v10 = vpop.f32.mrb[7].mxu1 }
  0xef   :  { %3584 = vmatprep.subr.bf16.mxu1 %v3992_v37  ;;  %v4283_v7 = vpop.f32.mrb[8].mxu0 }
  0xf0   :  { %v4286_v8 = vpop.f32.mrb[9].mxu0 }
  0xf1   :  { %3562 = vmatpush3.bf16.msra.mxu0 %v4155_v46  ;;  %v4301_v11 = vpop.f32.mrb[8].mxu1 }
  0xf2   :  { %3586 = vmatpush3.bf16.msra.mxu1 %v4155_v46  ;;  %3563 = vmatprep.subr.bf16.mxu0 %v3992_v37  ;;  %v4305_v12 = vpop.f32.mrb[9].mxu1 }
  0xf3   :  { %3587 = vmatprep.subr.bf16.mxu1 %v3992_v37 }
  0xf5   :  { %3565 = vmatpush3.bf16.msra.mxu0 %v4167_v49 }
  0xf6   :  { %3589 = vmatpush3.bf16.msra.mxu1 %v4167_v49  ;;  %3566 = vmatprep.subr.bf16.mxu0 %v3992_v37 }
  0xf7   :  { %3590 = vmatprep.subr.bf16.mxu1 %v3992_v37 }
  0xf9   :  { %3568 = vmatpush3.bf16.msra.mxu0 %v4179_v52 }
  0xfa   :  { %3592 = vmatpush3.bf16.msra.mxu1 %v4179_v52  ;;  %3569 = vmatprep.subr.bf16.mxu0 %v3992_v37 }
  0xfb   :  { %3593 = vmatprep.subr.bf16.mxu1 %v3992_v37 }
  0xfd   :  { %3571 = vmatpush3.bf16.msra.mxu0 %v4191_v55 }
  0xfe   :  { %3595 = vmatpush3.bf16.msra.mxu1 %v4191_v55  ;;  %3596 = vmatprep.subr.bf16.mxu0 %v3992_v37 }
  0xff   :  { %3620 = vmatprep.subr.bf16.mxu1 %v3992_v37 }
 0x100   :  { %2863 = vmatmul.mubr.f32.vlgmr.msra.gmra.mrb[12].mxu0 %v317_v58 }
 0x101   :  { %2898 = vmatmul.mubr.f32.vlgmr.msra.gmra.mrb[12].mxu1 %v319_v59  ;;  %3598 = vmatpush3.bf16.msra.mxu0 %v4100_v33 }
 0x102   :  { %3622 = vmatpush3.bf16.msra.mxu1 %v4100_v33  ;;  %3599 = vmatprep.subr.bf16.mxu0 %v3992_v37 }
 0x103   :  { %3623 = vmatprep.subr.bf16.mxu1 %v3992_v37  ;;  %2932 = vmatprep.mubr.msk.f32.mxu0 %vm3993_vm1, %v3991_v3 }
 0x104   :  { %2967 = vmatprep.mubr.msk.f32.mxu1 %vm3993_vm1, %v3991_v3 }
 0x105   :  { %3601 = vmatpush3.bf16.msra.mxu0 %v4117_v38 }
 0x106   :  { %3625 = vmatpush3.bf16.msra.mxu1 %v4117_v38  ;;  %3602 = vmatprep.subr.bf16.mxu0 %v3992_v37 }
 0x107   :  { %3626 = vmatprep.subr.bf16.mxu1 %v3992_v37 }
 0x109   :  { %3604 = vmatpush3.bf16.msra.mxu0 %v4131_v41 }
 0x10a   :  { %3628 = vmatpush3.bf16.msra.mxu1 %v4131_v41  ;;  %3605 = vmatprep.subr.bf16.mxu0 %v3992_v37 }
 0x10b   :  { %3629 = vmatprep.subr.bf16.mxu1 %v3992_v37 }
 0x10d   :  { %3607 = vmatpush3.bf16.msra.mxu0 %v4143_v43 }
 0x10e   :  { %3631 = vmatpush3.bf16.msra.mxu1 %v4143_v43  ;;  %3608 = vmatprep.subr.bf16.mxu0 %v3992_v37 }
 0x10f   :  { %3632 = vmatprep.subr.bf16.mxu1 %v3992_v37 }
 0x111   :  { %3610 = vmatpush3.bf16.msra.mxu0 %v4155_v46 }
 0x112   :  { %3634 = vmatpush3.bf16.msra.mxu1 %v4155_v46  ;;  %3611 = vmatprep.subr.bf16.mxu0 %v3992_v37 }
 0x113   :  { %3635 = vmatprep.subr.bf16.mxu1 %v3992_v37 }
 0x115   :  { %3613 = vmatpush3.bf16.msra.mxu0 %v4167_v49 }
 0x116   :  { %3637 = vmatpush3.bf16.msra.mxu1 %v4167_v49  ;;  %3614 = vmatprep.subr.bf16.mxu0 %v3992_v37 }
 0x117   :  { %3638 = vmatprep.subr.bf16.mxu1 %v3992_v37 }
 0x119   :  { %3616 = vmatpush3.bf16.msra.mxu0 %v4179_v52 }
 0x11a   :  { %3640 = vmatpush3.bf16.msra.mxu1 %v4179_v52  ;;  %3617 = vmatprep.subr.bf16.mxu0 %v3992_v37 }
 0x11b   :  { %3641 = vmatprep.subr.bf16.mxu1 %v3992_v37 }
 0x11d   :  { %3619 = vmatpush3.bf16.msra.mxu0 %v4191_v55 }
 0x11e   :  { %3643 = vmatpush3.bf16.msra.mxu1 %v4191_v55  ;;  %3644 = vmatprep.subr.bf16.mxu0 %v3992_v37 }
 0x11f   :  { %3668 = vmatprep.subr.bf16.mxu1 %v3992_v37 }
 0x120   :  { %2933 = vmatmul.mubr.f32.vlgmr.msra.gmra.mrb[14].mxu0 %v4210_v60 }
 0x121   :  { %2968 = vmatmul.mubr.f32.vlgmr.msra.gmra.mrb[14].mxu1 %v4214_v61  ;;  %3646 = vmatpush3.bf16.msra.mxu0 %v4100_v33 }
 0x122   :  { %3670 = vmatpush3.bf16.msra.mxu1 %v4100_v33  ;;  %3647 = vmatprep.subr.bf16.mxu0 %v3992_v37 }
 0x123   :  { %3671 = vmatprep.subr.bf16.mxu1 %v3992_v37  ;;  %3002 = vmatprep.mubr.msk.f32.mxu0 %vm3993_vm1, %v3991_v3 }
 0x124   :  { %3037 = vmatprep.mubr.msk.f32.mxu1 %vm3993_vm1, %v3991_v3 }
 0x125   :  { %3649 = vmatpush3.bf16.msra.mxu0 %v4117_v38 }
 0x126   :  { %3673 = vmatpush3.bf16.msra.mxu1 %v4117_v38  ;;  %3650 = vmatprep.subr.bf16.mxu0 %v3992_v37 }
 0x127   :  { %3674 = vmatprep.subr.bf16.mxu1 %v3992_v37 }
 0x129   :  { %3652 = vmatpush3.bf16.msra.mxu0 %v4131_v41 }
 0x12a   :  { %3676 = vmatpush3.bf16.msra.mxu1 %v4131_v41  ;;  %3653 = vmatprep.subr.bf16.mxu0 %v3992_v37 }
 0x12b   :  { %3677 = vmatprep.subr.bf16.mxu1 %v3992_v37 }
 0x12d   :  { %3655 = vmatpush3.bf16.msra.mxu0 %v4143_v43 }
 0x12e   :  { %3679 = vmatpush3.bf16.msra.mxu1 %v4143_v43  ;;  %3656 = vmatprep.subr.bf16.mxu0 %v3992_v37 }
 0x12f   :  { %3680 = vmatprep.subr.bf16.mxu1 %v3992_v37 }
 0x131   :  { %3658 = vmatpush3.bf16.msra.mxu0 %v4155_v46 }
 0x132   :  { %3682 = vmatpush3.bf16.msra.mxu1 %v4155_v46  ;;  %3659 = vmatprep.subr.bf16.mxu0 %v3992_v37 }
 0x133   :  { %3683 = vmatprep.subr.bf16.mxu1 %v3992_v37 }
 0x135   :  { %3661 = vmatpush3.bf16.msra.mxu0 %v4167_v49 }
 0x136   :  { %3685 = vmatpush3.bf16.msra.mxu1 %v4167_v49  ;;  %3662 = vmatprep.subr.bf16.mxu0 %v3992_v37 }
 0x137   :  { %3686 = vmatprep.subr.bf16.mxu1 %v3992_v37 }
 0x139   :  { %3664 = vmatpush3.bf16.msra.mxu0 %v4179_v52 }
 0x13a   :  { %3688 = vmatpush3.bf16.msra.mxu1 %v4179_v52  ;;  %3665 = vmatprep.subr.bf16.mxu0 %v3992_v37 }
 0x13b   :  { %3689 = vmatprep.subr.bf16.mxu1 %v3992_v37 }
 0x13d   :  { %3667 = vmatpush3.bf16.msra.mxu0 %v4191_v55 }
 0x13e   :  { %3691 = vmatpush3.bf16.msra.mxu1 %v4191_v55  ;;  %3692 = vmatprep.subr.bf16.mxu0 %v3992_v37 }
 0x13f   :  { %3716 = vmatprep.subr.bf16.mxu1 %v3992_v37 }
 0x140   :  { %3003 = vmatmul.mubr.f32.vlgmr.msra.gmra.mrb[16].mxu0 %v4217_v62 }
 0x141   :  { %3038 = vmatmul.mubr.f32.vlgmr.msra.gmra.mrb[16].mxu1 %v4221_v63  ;;  %3694 = vmatpush3.bf16.msra.mxu0 %v4100_v33 }
 0x142   :  { %3718 = vmatpush3.bf16.msra.mxu1 %v4100_v33  ;;  %3695 = vmatprep.subr.bf16.mxu0 %v3992_v37 }
 0x143   :  { %3719 = vmatprep.subr.bf16.mxu1 %v3992_v37  ;;  %3072 = vmatprep.mubr.msk.f32.mxu0 %vm3993_vm1, %v3991_v3 }
 0x144   :  { %3107 = vmatprep.mubr.msk.f32.mxu1 %vm3993_vm1, %v3991_v3 }
 0x145   :  { %3697 = vmatpush3.bf16.msra.mxu0 %v4117_v38 }
 0x146   :  { %3721 = vmatpush3.bf16.msra.mxu1 %v4117_v38  ;;  %3698 = vmatprep.subr.bf16.mxu0 %v3992_v37 }
 0x147   :  { %3722 = vmatprep.subr.bf16.mxu1 %v3992_v37 }
 0x149   :  { %3700 = vmatpush3.bf16.msra.mxu0 %v4131_v41 }
 0x14a   :  { %3724 = vmatpush3.bf16.msra.mxu1 %v4131_v41  ;;  %3701 = vmatprep.subr.bf16.mxu0 %v3992_v37 }
 0x14b   :  { %3725 = vmatprep.subr.bf16.mxu1 %v3992_v37 }
 0x14d   :  { %3703 = vmatpush3.bf16.msra.mxu0 %v4143_v43 }
 0x14e   :  { %3727 = vmatpush3.bf16.msra.mxu1 %v4143_v43  ;;  %3704 = vmatprep.subr.bf16.mxu0 %v3992_v37 }
 0x14f   :  { %3728 = vmatprep.subr.bf16.mxu1 %v3992_v37 }
 0x151   :  { %3706 = vmatpush3.bf16.msra.mxu0 %v4155_v46 }
 0x152   :  { %3730 = vmatpush3.bf16.msra.mxu1 %v4155_v46  ;;  %3707 = vmatprep.subr.bf16.mxu0 %v3992_v37 }
 0x153   :  { %3731 = vmatprep.subr.bf16.mxu1 %v3992_v37 }
 0x155   :  { %3709 = vmatpush3.bf16.msra.mxu0 %v4167_v49 }
 0x156   :  { %3733 = vmatpush3.bf16.msra.mxu1 %v4167_v49  ;;  %3710 = vmatprep.subr.bf16.mxu0 %v3992_v37 }
 0x157   :  { %3734 = vmatprep.subr.bf16.mxu1 %v3992_v37 }
 0x159   :  { %3712 = vmatpush3.bf16.msra.mxu0 %v4179_v52 }
 0x15a   :  { %3736 = vmatpush3.bf16.msra.mxu1 %v4179_v52  ;;  %3713 = vmatprep.subr.bf16.mxu0 %v3992_v37 }
 0x15b   :  { %3737 = vmatprep.subr.bf16.mxu1 %v3992_v37 }
 0x15d   :  { %3715 = vmatpush3.bf16.msra.mxu0 %v4191_v55 }
 0x15e   :  { %3739 = vmatpush3.bf16.msra.mxu1 %v4191_v55  ;;  %3740 = vmatprep.subr.bf16.mxu0 %v3992_v37 }
 0x15f   :  { %3764 = vmatprep.subr.bf16.mxu1 %v3992_v37 }
 0x160   :  { %3073 = vmatmul.mubr.f32.vlgmr.msra.gmra.mrb[18].mxu0 %v4224_v0 }
 0x161   :  { %3108 = vmatmul.mubr.f32.vlgmr.msra.gmra.mrb[18].mxu1 %v4226_v1  ;;  %3742 = vmatpush3.bf16.msra.mxu0 %v4100_v33  ;;  %v890_v1 = vlaneseq }
 0x162   :  { %3766 = vmatpush3.bf16.msra.mxu1 %v4100_v33  ;;  %3743 = vmatprep.subr.bf16.mxu0 %v3992_v37 }
 0x163   :  { %3767 = vmatprep.subr.bf16.mxu1 %v3992_v37  ;;  %3142 = vmatprep.mubr.msk.f32.mxu0 %vm3993_vm1, %v3991_v3 }
 0x164   :  { %3177 = vmatprep.mubr.msk.f32.mxu1 %vm3993_vm1, %v3991_v3 }
 0x165   :  { %3745 = vmatpush3.bf16.msra.mxu0 %v4117_v38 }
 0x166   :  { %3769 = vmatpush3.bf16.msra.mxu1 %v4117_v38  ;;  %3746 = vmatprep.subr.bf16.mxu0 %v3992_v37 }
 0x167   :  { %3770 = vmatprep.subr.bf16.mxu1 %v3992_v37 }
 0x169   :  { %3748 = vmatpush3.bf16.msra.mxu0 %v4131_v41 }
 0x16a   :  { %3772 = vmatpush3.bf16.msra.mxu1 %v4131_v41  ;;  %3749 = vmatprep.subr.bf16.mxu0 %v3992_v37 }
 0x16b   :  { %3773 = vmatprep.subr.bf16.mxu1 %v3992_v37 }
 0x16d   :  { %3751 = vmatpush3.bf16.msra.mxu0 %v4143_v43 }
 0x16e   :  { %3775 = vmatpush3.bf16.msra.mxu1 %v4143_v43  ;;  %3752 = vmatprep.subr.bf16.mxu0 %v3992_v37 }
 0x16f   :  { %3776 = vmatprep.subr.bf16.mxu1 %v3992_v37 }
 0x171   :  { %3754 = vmatpush3.bf16.msra.mxu0 %v4155_v46 }
 0x172   :  { %3778 = vmatpush3.bf16.msra.mxu1 %v4155_v46  ;;  %3755 = vmatprep.subr.bf16.mxu0 %v3992_v37 }
 0x173   :  { %3779 = vmatprep.subr.bf16.mxu1 %v3992_v37 }
 0x175   :  { %3757 = vmatpush3.bf16.msra.mxu0 %v4167_v49 }
 0x176   :  { %3781 = vmatpush3.bf16.msra.mxu1 %v4167_v49  ;;  %3758 = vmatprep.subr.bf16.mxu0 %v3992_v37 }
 0x177   :  { %3782 = vmatprep.subr.bf16.mxu1 %v3992_v37 }
 0x179   :  { %3760 = vmatpush3.bf16.msra.mxu0 %v4179_v52 }
 0x17a   :  { %3784 = vmatpush3.bf16.msra.mxu1 %v4179_v52  ;;  %3761 = vmatprep.subr.bf16.mxu0 %v3992_v37 }
 0x17b   :  { %3785 = vmatprep.subr.bf16.mxu1 %v3992_v37 }
 0x17d   :  { %3763 = vmatpush3.bf16.msra.mxu0 %v4191_v55 }
 0x17e   :  { %3787 = vmatpush3.bf16.msra.mxu1 %v4191_v55  ;;  %3788 = vmatprep.subr.bf16.mxu0 %v3992_v37 }
 0x17f   :  { %3812 = vmatprep.subr.bf16.mxu1 %v3992_v37 }
 0x180   :  { %3143 = vmatmul.mubr.f32.vlgmr.msra.gmra.mrb[20].mxu0 %v4251_v2 }
 0x181   :  { %3178 = vmatmul.mubr.f32.vlgmr.msra.gmra.mrb[20].mxu1 %v4254_v4  ;;  %3790 = vmatpush3.bf16.msra.mxu0 %v4100_v33  ;;  %v891_v4 = vshrl.u32 %v890_v1, 7 }
 0x182   :  { %3814 = vmatpush3.bf16.msra.mxu1 %v4100_v33  ;;  %3791 = vmatprep.subr.bf16.mxu0 %v3992_v37 }
 0x183   :  { %3815 = vmatprep.subr.bf16.mxu1 %v3992_v37  ;;  %3212 = vmatprep.mubr.msk.f32.mxu0 %vm3993_vm1, %v3991_v3  ;;  %vm894_vm2 = vcmp.lt.s32.totalorder %v891_v4, 6 }
 0x184   :  { %3247 = vmatprep.mubr.msk.f32.mxu1 %vm3993_vm1, %v3991_v3 }
 0x185   :  { %3793 = vmatpush3.bf16.msra.mxu0 %v4117_v38 }
 0x186   :  { %3817 = vmatpush3.bf16.msra.mxu1 %v4117_v38  ;;  %3794 = vmatprep.subr.bf16.mxu0 %v3992_v37 }
 0x187   :  { %3818 = vmatprep.subr.bf16.mxu1 %v3992_v37 }
 0x189   :  { %3796 = vmatpush3.bf16.msra.mxu0 %v4131_v41 }
 0x18a   :  { %3820 = vmatpush3.bf16.msra.mxu1 %v4131_v41  ;;  %3797 = vmatprep.subr.bf16.mxu0 %v3992_v37 }
 0x18b   :  { %3821 = vmatprep.subr.bf16.mxu1 %v3992_v37 }
 0x18d   :  { %3799 = vmatpush3.bf16.msra.mxu0 %v4143_v43 }
 0x18e   :  { %3823 = vmatpush3.bf16.msra.mxu1 %v4143_v43  ;;  %3800 = vmatprep.subr.bf16.mxu0 %v3992_v37 }
 0x18f   :  { %3824 = vmatprep.subr.bf16.mxu1 %v3992_v37 }
 0x191   :  { %3802 = vmatpush3.bf16.msra.mxu0 %v4155_v46 }
 0x192   :  { %3826 = vmatpush3.bf16.msra.mxu1 %v4155_v46  ;;  %3803 = vmatprep.subr.bf16.mxu0 %v3992_v37 }
 0x193   :  { %3827 = vmatprep.subr.bf16.mxu1 %v3992_v37 }
 0x195   :  { %3805 = vmatpush3.bf16.msra.mxu0 %v4167_v49 }
 0x196   :  { %3829 = vmatpush3.bf16.msra.mxu1 %v4167_v49  ;;  %3806 = vmatprep.subr.bf16.mxu0 %v3992_v37 }
 0x197   :  { %3830 = vmatprep.subr.bf16.mxu1 %v3992_v37 }
 0x199   :  { %3808 = vmatpush3.bf16.msra.mxu0 %v4179_v52 }
 0x19a   :  { %3832 = vmatpush3.bf16.msra.mxu1 %v4179_v52  ;;  %3809 = vmatprep.subr.bf16.mxu0 %v3992_v37 }
 0x19b   :  { %3833 = vmatprep.subr.bf16.mxu1 %v3992_v37 }
 0x19d   :  { %3811 = vmatpush3.bf16.msra.mxu0 %v4191_v55 }
 0x19e   :  { %3835 = vmatpush3.bf16.msra.mxu1 %v4191_v55  ;;  %3836 = vmatprep.subr.bf16.mxu0 %v3992_v37 }
 0x19f   :  { %3860 = vmatprep.subr.bf16.mxu1 %v3992_v37 }
 0x1a0   :  { %3213 = vmatmul.mubr.f32.vlgmr.msra.gmra.mrb[22].mxu0 %v4275_v5  ;;  %v893_v5 = vand.u32 127, %v890_v1 }
 0x1a1   :  { %3248 = vmatmul.mubr.f32.vlgmr.msra.gmra.mrb[22].mxu1 %v4278_v6  ;;  %3838 = vmatpush3.bf16.msra.mxu0 %v4100_v33 }
 0x1a2   :  { %3862 = vmatpush3.bf16.msra.mxu1 %v4100_v33  ;;  %3839 = vmatprep.subr.bf16.mxu0 %v3992_v37  ;;  %vm895_vm3 = vcmp.lt.s32.totalorder %v893_v5, 6 }
 0x1a3   :  { %3863 = vmatprep.subr.bf16.mxu1 %v3992_v37  ;;  %3282 = vmatprep.mubr.msk.f32.mxu0 %vm3993_vm1, %v3991_v3  ;;  %vm4578_vm4 = vmand %vm894_vm2, %vm895_vm3 }
 0x1a4   :  { %3317 = vmatprep.mubr.msk.f32.mxu1 %vm3993_vm1, %v3991_v3 }
 0x1a5   :  { %3841 = vmatpush3.bf16.msra.mxu0 %v4117_v38 }
 0x1a6   :  { %3865 = vmatpush3.bf16.msra.mxu1 %v4117_v38  ;;  %3842 = vmatprep.subr.bf16.mxu0 %v3992_v37 }
 0x1a7   :  { %3866 = vmatprep.subr.bf16.mxu1 %v3992_v37 }
 0x1a9   :  { %3844 = vmatpush3.bf16.msra.mxu0 %v4131_v41 }
 0x1aa   :  { %3868 = vmatpush3.bf16.msra.mxu1 %v4131_v41  ;;  %3845 = vmatprep.subr.bf16.mxu0 %v3992_v37 }
 0x1ab   :  { %3869 = vmatprep.subr.bf16.mxu1 %v3992_v37 }
 0x1ad   :  { %3847 = vmatpush3.bf16.msra.mxu0 %v4143_v43 }
 0x1ae   :  { %3871 = vmatpush3.bf16.msra.mxu1 %v4143_v43  ;;  %3848 = vmatprep.subr.bf16.mxu0 %v3992_v37 }
 0x1af   :  { %3872 = vmatprep.subr.bf16.mxu1 %v3992_v37 }
 0x1b1   :  { %3850 = vmatpush3.bf16.msra.mxu0 %v4155_v46 }
 0x1b2   :  { %3874 = vmatpush3.bf16.msra.mxu1 %v4155_v46  ;;  %3851 = vmatprep.subr.bf16.mxu0 %v3992_v37 }
 0x1b3   :  { %v979_v13 = vpop.f32.mrb[10].mxu0  ;;  %3875 = vmatprep.subr.bf16.mxu1 %v3992_v37 }
 0x1b4   :  { %v1263_v14 = vmul.f32 %v979_v13, %v979_v13  ;;  %v2794_v15 = vpop.f32.mrb[11].mxu0  ;;  %v1049_v16 = vpop.f32.mrb[10].mxu1 }
 0x1b5   :  { %v1264_v17 = vmul.f32 %v1049_v16, %v1049_v16  ;;  %v4486_v18 = vmul.f32 %v1049_v16, %v979_v13  ;;  %3853 = vmatpush3.bf16.msra.mxu0 %v4167_v49  ;;  %v2829_v19 = vpop.f32.mrb[11].mxu1 }
 0x1b6   :  { %3877 = vmatpush3.bf16.msra.mxu1 %v4167_v49  ;;  %3854 = vmatprep.subr.bf16.mxu0 %v3992_v37 }
 0x1b7   :  { %v1274_v20 = vadd.f32 %v1264_v17, %v1263_v14  ;;  %3878 = vmatprep.subr.bf16.mxu1 %v3992_v37  ;;  %v1269_v31 = vmul.f32 2.0, %v4486_v18 }
 0x1b9   :  { %3856 = vmatpush3.bf16.msra.mxu0 %v4179_v52  ;;  %v1275_v28 = vadd.f32 6.5025, %v1274_v20  ;;  %v1270_v39 = vadd.f32 6.5025, %v1269_v31 }
 0x1ba   :  { %3880 = vmatpush3.bf16.msra.mxu1 %v4179_v52  ;;  %3857 = vmatprep.subr.bf16.mxu0 %v3992_v37 }
 0x1bb   :  { %3881 = vmatprep.subr.bf16.mxu1 %v3992_v37 }
 0x1bd   :  { %3859 = vmatpush3.bf16.msra.mxu0 %v4191_v55 }
 0x1be   :  { %3883 = vmatpush3.bf16.msra.mxu1 %v4191_v55  ;;  %3884 = vmatprep.subr.bf16.mxu0 %v3992_v37 }
 0x1bf   :  { %3908 = vmatprep.subr.bf16.mxu1 %v3992_v37 }
 0x1c0   :  { %3283 = vmatmul.mubr.f32.vlgmr.msra.gmra.mrb[24].mxu0 %v4293_v9 }
 0x1c1   :  { %3318 = vmatmul.mubr.f32.vlgmr.msra.gmra.mrb[24].mxu1 %v4297_v10  ;;  %3886 = vmatpush3.bf16.msra.mxu0 %v4100_v33 }
 0x1c2   :  { %3910 = vmatpush3.bf16.msra.mxu1 %v4100_v33  ;;  %3887 = vmatprep.subr.bf16.mxu0 %v3992_v37 }
 0x1c3   :  { %3911 = vmatprep.subr.bf16.mxu1 %v3992_v37  ;;  %3352 = vmatprep.mubr.msk.f32.mxu0 %vm3993_vm1, %v3991_v3 }
 0x1c4   :  { %3387 = vmatprep.mubr.msk.f32.mxu1 %vm3993_vm1, %v3991_v3 }
 0x1c5   :  { %3889 = vmatpush3.bf16.msra.mxu0 %v4117_v38 }
 0x1c6   :  { %3913 = vmatpush3.bf16.msra.mxu1 %v4117_v38  ;;  %3890 = vmatprep.subr.bf16.mxu0 %v3992_v37 }
 0x1c7   :  { %3914 = vmatprep.subr.bf16.mxu1 %v3992_v37 }
 0x1c9   :  { %3892 = vmatpush3.bf16.msra.mxu0 %v4131_v41 }
 0x1ca   :  { %3916 = vmatpush3.bf16.msra.mxu1 %v4131_v41  ;;  %3893 = vmatprep.subr.bf16.mxu0 %v3992_v37 }
 0x1cb   :  { %3917 = vmatprep.subr.bf16.mxu1 %v3992_v37 }
 0x1cd   :  { %3895 = vmatpush3.bf16.msra.mxu0 %v4143_v43 }
 0x1ce   :  { %3919 = vmatpush3.bf16.msra.mxu1 %v4143_v43  ;;  %3896 = vmatprep.subr.bf16.mxu0 %v3992_v37 }
 0x1cf   :  { %3920 = vmatprep.subr.bf16.mxu1 %v3992_v37 }
 0x1d1   :  { %3898 = vmatpush3.bf16.msra.mxu0 %v4155_v46 }
 0x1d2   :  { %3922 = vmatpush3.bf16.msra.mxu1 %v4155_v46  ;;  %3899 = vmatprep.subr.bf16.mxu0 %v3992_v37 }
 0x1d3   :  { %v1119_v21 = vpop.f32.mrb[12].mxu0  ;;  %3923 = vmatprep.subr.bf16.mxu1 %v3992_v37 }
 0x1d4   :  { %v1266_v22 = vsub.f32 %v1119_v21, %v1263_v14  ;;  %v2864_v23 = vpop.f32.mrb[13].mxu0  ;;  %v1189_v24 = vpop.f32.mrb[12].mxu1 }
 0x1d5   :  { %v1267_v25 = vsub.f32 %v1189_v24, %v1264_v17  ;;  %v2899_v26 = vpop.f32.mrb[13].mxu1  ;;  %3901 = vmatpush3.bf16.msra.mxu0 %v4167_v49 }
 0x1d6   :  { %3925 = vmatpush3.bf16.msra.mxu1 %v4167_v49  ;;  %3902 = vmatprep.subr.bf16.mxu0 %v3992_v37 }
 0x1d7   :  { %v1276_v27 = vadd.f32 %v1267_v25, %v1266_v22  ;;  %3926 = vmatprep.subr.bf16.mxu1 %v3992_v37 }
 0x1d9   :  { %v1277_v29 = vadd.f32 58.5225, %v1276_v27  ;;  %3904 = vmatpush3.bf16.msra.mxu0 %v4179_v52 }
 0x1da   :  { %3928 = vmatpush3.bf16.msra.mxu1 %v4179_v52  ;;  %3905 = vmatprep.subr.bf16.mxu0 %v3992_v37 }
 0x1db   :  { %v1278_v30 = vmul.f32 %v1277_v29, %v1275_v28  ;;  %3929 = vmatprep.subr.bf16.mxu1 %v3992_v37 }
 0x1dd   :  { %3907 = vmatpush3.bf16.msra.mxu0 %v4191_v55  ;;  %3983 = vrcp.f32 %v1278_v30 }
 0x1de   :  { %3931 = vmatpush3.bf16.msra.mxu1 %v4191_v55  ;;  %3932 = vmatprep.subr.bf16.mxu0 %v3992_v37 }
 0x1df   :  { %3956 = vmatprep.subr.bf16.mxu1 %v3992_v37 }
 0x1e0   :  { %3353 = vmatmul.mubr.f32.vlgmr.msra.gmra.mrb[26].mxu0 %v4283_v7 }
 0x1e1   :  { %3388 = vmatmul.mubr.f32.vlgmr.msra.gmra.mrb[26].mxu1 %v4286_v8  ;;  %3934 = vmatpush3.bf16.msra.mxu0 %v4100_v33 }
 0x1e2   :  { %3958 = vmatpush3.bf16.msra.mxu1 %v4100_v33  ;;  %3935 = vmatprep.subr.bf16.mxu0 %v3992_v37 }
 0x1e3   :  { %3959 = vmatprep.subr.bf16.mxu1 %v3992_v37  ;;  %3422 = vmatprep.mubr.msk.f32.mxu0 %vm3993_vm1, %v3991_v3 }
 0x1e4   :  { %3457 = vmatprep.mubr.msk.f32.mxu1 %vm3993_vm1, %v3991_v3 }
 0x1e5   :  { %3937 = vmatpush3.bf16.msra.mxu0 %v4117_v38 }
 0x1e6   :  { %3961 = vmatpush3.bf16.msra.mxu1 %v4117_v38  ;;  %3938 = vmatprep.subr.bf16.mxu0 %v3992_v37 }
 0x1e7   :  { %3962 = vmatprep.subr.bf16.mxu1 %v3992_v37  ;;  %v3984_v36 = vpop.eup %3983 }
 0x1e9   :  { %3940 = vmatpush3.bf16.msra.mxu0 %v4131_v41 }
 0x1ea   :  { %3964 = vmatpush3.bf16.msra.mxu1 %v4131_v41  ;;  %3941 = vmatprep.subr.bf16.mxu0 %v3992_v37 }
 0x1eb   :  { %3965 = vmatprep.subr.bf16.mxu1 %v3992_v37 }
 0x1ed   :  { %3943 = vmatpush3.bf16.msra.mxu0 %v4143_v43 }
 0x1ee   :  { %3967 = vmatpush3.bf16.msra.mxu1 %v4143_v43  ;;  %3944 = vmatprep.subr.bf16.mxu0 %v3992_v37 }
 0x1ef   :  { %3968 = vmatprep.subr.bf16.mxu1 %v3992_v37 }
 0x1f1   :  { %3946 = vmatpush3.bf16.msra.mxu0 %v4155_v46 }
 0x1f2   :  { %3970 = vmatpush3.bf16.msra.mxu1 %v4155_v46  ;;  %3947 = vmatprep.subr.bf16.mxu0 %v3992_v37 }
 0x1f3   :  { %v1259_v3 = vpop.f32.mrb[14].mxu0  ;;  %3971 = vmatprep.subr.bf16.mxu1 %v3992_v37 }
 0x1f4   :  { %v1268_v32 = vsub.f32 %v1259_v3, %v4486_v18  ;;  %v2934_v33 = vpop.f32.mrb[15].mxu0  ;;  %v1349_v34 = vpop.f32.mrb[14].mxu1 }
 0x1f5   :  { %v2969_v35 = vpop.f32.mrb[15].mxu1  ;;  %3949 = vmatpush3.bf16.msra.mxu0 %v4167_v49  ;;  %v1633_v43 = vmul.f32 %v1349_v34, %v1349_v34 }
 0x1f6   :  { %v1271_v38 = vmul.f32 2.0, %v1268_v32  ;;  %3973 = vmatpush3.bf16.msra.mxu1 %v4167_v49  ;;  %3950 = vmatprep.subr.bf16.mxu0 %v3992_v37 }
 0x1f7   :  { %3974 = vmatprep.subr.bf16.mxu1 %v3992_v37 }
 0x1f8   :  { %v1272_v40 = vadd.f32 58.5225, %v1271_v38 }
 0x1f9   :  { %3952 = vmatpush3.bf16.msra.mxu0 %v4179_v52 }
 0x1fa   :  { %v1273_v41 = vmul.f32 %v1272_v40, %v1270_v39  ;;  %3976 = vmatpush3.bf16.msra.mxu1 %v4179_v52  ;;  %3953 = vmatprep.subr.bf16.mxu0 %v3992_v37 }
 0x1fb   :  { %3977 = vmatprep.subr.bf16.mxu1 %v3992_v37 }
 0x1fc   :  { %v1280_v42 = vmul.f32 %v3984_v36, %v1273_v41 }
 0x1fd   :  { %3955 = vmatpush3.bf16.msra.mxu0 %v4191_v55 }
 0x1fe   :  { %3979 = vmatpush3.bf16.msra.mxu1 %v4191_v55  ;;  %v1281_v9 = vsel %vm4578_vm4, %v1280_v42, 0.0 }
 0x200   :  { %3423 = vmatmul.mubr.f32.vlgmr.msra.gmra.mrb[28].mxu0 %v4301_v11 }
 0x201   :  { %3458 = vmatmul.mubr.f32.vlgmr.msra.gmra.mrb[28].mxu1 %v4305_v12 }
 0x213   :  { %v1419_v44 = vpop.f32.mrb[16].mxu0 }
 0x214   :  { %v1634_v45 = vmul.f32 %v1419_v44, %v1419_v44  ;;  %v1635_v46 = vmul.f32 %v1419_v44, %v1349_v34  ;;  %v3004_v47 = vpop.f32.mrb[17].mxu0  ;;  %v1489_v48 = vpop.f32.mrb[16].mxu1 }
 0x215   :  { %v1636_v49 = vsub.f32 %v1489_v48, %v1633_v43  ;;  %v3039_v50 = vpop.f32.mrb[17].mxu1 }
 0x216   :  { %v1644_v51 = vadd.f32 %v1634_v45, %v1633_v43  ;;  %v1639_v56 = vmul.f32 2.0, %v1635_v46 }
 0x218   :  { %v1645_v60 = vadd.f32 6.5025, %v1644_v51  ;;  %v1640_v62 = vadd.f32 6.5025, %v1639_v56 }
 0x233   :  { %v1559_v52 = vpop.f32.mrb[18].mxu0 }
 0x234   :  { %v1637_v37 = vsub.f32 %v1559_v52, %v1634_v45  ;;  %v3074_v53 = vpop.f32.mrb[19].mxu0  ;;  %v1629_v54 = vpop.f32.mrb[18].mxu1 }
 0x235   :  { %v1638_v57 = vsub.f32 %v1629_v54, %v1635_v46  ;;  %v3109_v55 = vpop.f32.mrb[19].mxu1 }
 0x236   :  { %v1646_v58 = vadd.f32 %v1637_v37, %v1636_v49 }
 0x237   :  { %v1641_v59 = vmul.f32 2.0, %v1638_v57 }
 0x238   :  { %v1647_v61 = vadd.f32 58.5225, %v1646_v58 }
 0x239   :  { %v1642_v63 = vadd.f32 58.5225, %v1641_v59 }
 0x23a   :  { %v1648_v0 = vmul.f32 %v1647_v61, %v1645_v60 }
 0x23b   :  { %v1643_v2 = vmul.f32 %v1642_v63, %v1640_v62 }
 0x23c   :  { %3985 = vrcp.f32 %v1648_v0 }
 0x246   :  { %v3986_v6 = vpop.eup %3985 }
 0x247   :  { %v1650_v8 = vmul.f32 %v3986_v6, %v1643_v2 }
 0x249   :  { %v1651_v10 = vsel %vm4578_vm4, %v1650_v8, 0.0 }
 0x24a   :  { %v1652_v11 = vadd.f32 %v1651_v10, %v1281_v9 }
 0x253   :  { %v1719_v12 = vpop.f32.mrb[20].mxu0 }
 0x254   :  { %v2003_v13 = vmul.f32 %v1719_v12, %v1719_v12  ;;  %v3144_v14 = vpop.f32.mrb[21].mxu0  ;;  %v1789_v15 = vpop.f32.mrb[20].mxu1 }
 0x255   :  { %v2004_v16 = vmul.f32 %v1789_v15, %v1789_v15  ;;  %v2005_v17 = vmul.f32 %v1789_v15, %v1719_v12  ;;  %v3179_v18 = vpop.f32.mrb[21].mxu1 }
 0x257   :  { %v2014_v19 = vadd.f32 %v2004_v16, %v2003_v13  ;;  %v2009_v3 = vmul.f32 2.0, %v2005_v17 }
 0x259   :  { %v2015_v27 = vadd.f32 6.5025, %v2014_v19  ;;  %v2010_v38 = vadd.f32 6.5025, %v2009_v3 }
 0x273   :  { %v1859_v20 = vpop.f32.mrb[22].mxu0 }
 0x274   :  { %v2006_v21 = vsub.f32 %v1859_v20, %v2003_v13  ;;  %v3214_v22 = vpop.f32.mrb[23].mxu0  ;;  %v1929_v23 = vpop.f32.mrb[22].mxu1 }
 0x275   :  { %v2007_v24 = vsub.f32 %v1929_v23, %v2004_v16  ;;  %v3249_v25 = vpop.f32.mrb[23].mxu1 }
 0x277   :  { %v2016_v26 = vadd.f32 %v2007_v24, %v2006_v21 }
 0x279   :  { %v2017_v28 = vadd.f32 58.5225, %v2016_v26 }
 0x27b   :  { %v2018_v29 = vmul.f32 %v2017_v28, %v2015_v27 }
 0x27d   :  { %3987 = vrcp.f32 %v2018_v29 }
 0x287   :  { %v3988_v41 = vpop.eup %3987 }
 0x293   :  { %v1999_v30 = vpop.f32.mrb[24].mxu0 }
 0x294   :  { %v2008_v31 = vsub.f32 %v1999_v30, %v2005_v17  ;;  %v3284_v32 = vpop.f32.mrb[25].mxu0  ;;  %v2089_v33 = vpop.f32.mrb[24].mxu1 }
 0x295   :  { %v3319_v34 = vpop.f32.mrb[25].mxu1  ;;  %v2373_v44 = vmul.f32 %v2089_v33, %v2089_v33 }
 0x296   :  { %v2011_v35 = vmul.f32 2.0, %v2008_v31 }
 0x298   :  { %v2012_v39 = vadd.f32 58.5225, %v2011_v35 }
 0x29a   :  { %v2013_v40 = vmul.f32 %v2012_v39, %v2010_v38 }
 0x29c   :  { %v2020_v36 = vmul.f32 %v3988_v41, %v2013_v40 }
 0x29e   :  { %v2021_v42 = vsel %vm4578_vm4, %v2020_v36, 0.0 }
 0x29f   :  { %v2022_v43 = vadd.f32 %v2021_v42, %v1652_v11 }
 0x2b3   :  { %v2159_v45 = vpop.f32.mrb[26].mxu0 }
 0x2b4   :  { %v2374_v46 = vmul.f32 %v2159_v45, %v2159_v45  ;;  %v2375_v47 = vmul.f32 %v2159_v45, %v2089_v33  ;;  %v3354_v48 = vpop.f32.mrb[27].mxu0  ;;  %v2229_v49 = vpop.f32.mrb[26].mxu1 }
 0x2b5   :  { %v2376_v50 = vsub.f32 %v2229_v49, %v2373_v44  ;;  %v3389_v51 = vpop.f32.mrb[27].mxu1 }
 0x2b6   :  { %v2384_v52 = vadd.f32 %v2374_v46, %v2373_v44  ;;  %v2379_v57 = vmul.f32 2.0, %v2375_v47 }
 0x2b8   :  { %v2385_v61 = vadd.f32 6.5025, %v2384_v52  ;;  %v2380_v63 = vadd.f32 6.5025, %v2379_v57 }
 0x2d3   :  { %v2299_v37 = vpop.f32.mrb[28].mxu0 }
 0x2d4   :  { %v2377_v53 = vsub.f32 %v2299_v37, %v2374_v46  ;;  %v3424_v54 = vpop.f32.mrb[29].mxu0  ;;  %v2369_v56 = vpop.f32.mrb[28].mxu1 }
 0x2d5   :  { %v2378_v55 = vsub.f32 %v2369_v56, %v2375_v47  ;;  %v3459_v58 = vpop.f32.mrb[29].mxu1 }
 0x2d6   :  { %v2386_v59 = vadd.f32 %v2377_v53, %v2376_v50 }
 0x2d7   :  { %v2381_v60 = vmul.f32 2.0, %v2378_v55 }
 0x2d8   :  { %v2387_v62 = vadd.f32 58.5225, %v2386_v59 }
 0x2d9   :  { %v2382_v0 = vadd.f32 58.5225, %v2381_v60 }
 0x2da   :  { %v2388_v1 = vmul.f32 %v2387_v62, %v2385_v61 }
 0x2db   :  { %v2383_v2 = vmul.f32 %v2382_v0, %v2380_v63 }
 0x2dc   :  { %3989 = vrcp.f32 %v2388_v1 }
 0x2e6   :  { %v3990_v4 = vpop.eup %3989 }
 0x2e7   :  { %v2390_v5 = vmul.f32 %v3990_v4, %v2383_v2 }
 0x2e9   :  { %v2391_v6 = vsel %vm4578_vm4, %v2390_v5, 0.0 }
 0x2ea   :  { %v2392_v8 = vadd.f32 %v2391_v6, %v2022_v43 }
 0x2ec   :  { %2393 = vst [vmem:[%s4597_s4] sm:$0xff] %v2392_v8 }

</bundles_post_ra>
